<compile_context>
chip_gen: v7x
topology: tpu7x:2x2x1
jax: 0.10.0
libtpu: 0.0.40
codegen_flags: <defaults>
</compile_context>

<pallas_src>
import numpy as np
import jax
import jax.numpy as jnp
from jax import lax
from jax.experimental import pallas as pl
from jax.experimental.pallas import tpu as pltpu


def _out_size(n):
    # Conv2d(kernel=3, stride=2, padding=1) output size.
    return (n - 1) // 2 + 1


def _make_kernel(num_sheet, H0, W0):
    S = num_sheet
    hs, ws = [H0], [W0]
    for _ in range(3):
        hs.append(_out_size(hs[-1]))
        ws.append(_out_size(ws[-1]))
    H3, W3 = hs[3], ws[3]
    n_out = S * H3 * W3
    HIGH = lax.Precision.HIGHEST  # keep the tiny matmuls exact in f32

    def kernel(x_ref, wb_ref, out_ref):
        # x_ref : (H0, S*(W0+2)) int32 - raw stock cells, lane-packed sheets,
        #         one zero column around each sheet (0 != -1 -> empty-mask 0).
        # wb_ref: SMEM f32[30] - 27 conv taps (layer, ki, kj row-major) + 3 biases.
        # out_ref: (1, S*H3*W3) f32 - flattened CNN features, sheet-major.

        # preprocess (in-kernel): 1.0 for empty (-1) cells, 0.0 otherwise.
        act = (x_ref[...] == -1).astype(jnp.float32)        # (H0, S*(W0+2))

        for layer in range(3):
            h_in, w_in = hs[layer], ws[layer]
            h_out, w_out = hs[layer + 1], ws[layer + 1]
            wp = w_in + 2                 # per-sheet (column-padded) width of act
            wz = S * wp - 2               # width of the dense-column response
            wgt = [wb_ref[9 * layer + t] for t in range(9)]   # hoisted SMEM reads
            bias = wb_ref[27 + layer]

            # Row-tap matrices: M_ki[i, r] = 1 iff act row r feeds output row i
            # through vertical tap ki (r == 2*i + ki - 1; the -1 is the implicit
            # zero row border of padding=1, out-of-range taps never match -> 0).
            ii = lax.broadcasted_iota(jnp.int32, (h_out, h_in), 0)
            rr = lax.broadcasted_iota(jnp.int32, (h_out, h_in), 1)
            row_masks = [
                (rr == 2 * ii + (ki - 1)).astype(jnp.float32) for ki in range(3)
            ]

            # Dense-column response z[i, g] = sum_{ki,kj} w[ki,kj]*act[2i+ki-1, g+kj]:
            # one tiny MXU matmul per horizontal tap - the otherwise idle MXU does
            # both the row-tap reduction and the stride-2 row downsample.
            z = None
            for kj in range(3):
                wleft = (wgt[0 + kj] * row_masks[0]
                         + wgt[3 + kj] * row_masks[1]
                         + wgt[6 + kj] * row_masks[2])            # (h_out, h_in)
                shifted = lax.slice(act, (0, kj), (h_in, kj + wz))  # unit strides
                part = jnp.dot(wleft, shifted,
                               preferred_element_type=jnp.float32, precision=HIGH)
                z = part if z is None else z + part                # (h_out, wz)

            if layer < 2:
                # Stride-2 column selection fused with spreading into the next
                # layer's lane-packed, column-padded layout.  Border columns get
                # 0 from the matmul and a masked bias, so relu keeps them 0.
                wp_n = w_out + 2
                wtot_n = S * wp_n
                gg = lax.broadcasted_iota(jnp.int32, (wz, wtot_n), 0)
                cc = lax.broadcasted_iota(jnp.int32, (wz, wtot_n), 1)
                cc1 = lax.broadcasted_iota(jnp.int32, (1, wtot_n), 1)
                sel = jnp.zeros((wz, wtot_n), jnp.float32)
                interior = jnp.zeros((1, wtot_n), jnp.float32)
                for s in range(S):
                    lo = s * wp_n + 1
                    in_sheet = (cc >= lo) & (cc < lo + w_out)
                    sel = sel + (in_sheet
                                 & (gg == s * wp + 2 * (cc - lo))
                                 ).astype(jnp.float32)
                    interior = interior + ((cc1 >= lo)
                                           & (cc1 < lo + w_out)
                                           ).astype(jnp.float32)
                y = jnp.dot(z, sel, preferred_element_type=jnp.float32,
                            precision=HIGH)
                act = jnp.maximum(y + bias * interior, 0.0)        # (h_out, wtot_n)
            else:
                # Final layer: select stride-2 columns and scatter straight into
                # the flattened (sheet-major, row-major) output order so the
                # result is written once, lane-contiguously.
                gg = lax.broadcasted_iota(jnp.int32, (wz, n_out), 0)
                cc = lax.broadcasted_iota(jnp.int32, (wz, n_out), 1)
                acc = jnp.zeros((1, n_out), jnp.float32)
                for i in range(h_out):
                    sel = jnp.zeros((wz, n_out), jnp.float32)
                    for s in range(S):
                        base = s * H3 * W3 + i * W3
                        in_blk = (cc >= base) & (cc < base + W3)
                        sel = sel + (in_blk
                                     & (gg == s * wp + 2 * (cc - base))
                                     ).astype(jnp.float32)
                    acc = acc + jnp.dot(z[i:i + 1, :], sel,
                                        preferred_element_type=jnp.float32,
                                        precision=HIGH)
                out_ref[...] = jnp.maximum(acc + bias, 0.0)

    return kernel


def cnn_encode(stocks, weights, biases):
    """stocks: (num_sheet, H, W) integer grid, -1 = empty cell.
    Returns (1, num_sheet*H3*W3) f32 CNN features (sheet-major, row-major)."""
    S, H0, W0 = stocks.shape
    H3 = _out_size(_out_size(_out_size(H0)))
    W3 = _out_size(_out_size(_out_size(W0)))
    wp0 = W0 + 2
    n_out = S * H3 * W3

    # Lane-pack the sheets on the cheap integer input: (H0, S*(W0+2)) with a
    # zero column border per sheet (0 != -1, so the in-kernel empty-mask is 0
    # there).  Compare / cast / conv padding all happen inside the kernel, so
    # no padded f32 array ever hits HBM.
    packed = jnp.pad(stocks.astype(jnp.int32), ((0, 0), (0, 0), (1, 1)))
    packed = packed.transpose(1, 0, 2).reshape(H0, S * wp0)

    # 27 conv taps + 3 biases in a single 1-D SMEM table (pads to 128 B).
    wb = jnp.concatenate(
        [weights.reshape(27), biases.reshape(3)]).astype(jnp.float32)

    kernel = _make_kernel(S, H0, W0)
    out = pl.pallas_call(
        kernel,
        out_shape=jax.ShapeDtypeStruct((1, n_out), jnp.float32),
        grid=(1,),
        in_specs=[
            pl.BlockSpec((H0, S * wp0), lambda i: (0, 0)),
            pl.BlockSpec(memory_space=pltpu.MemorySpace.SMEM),     # weights+biases
        ],
        out_specs=pl.BlockSpec((1, n_out), lambda i: (0, 0)),
        compiler_params=pltpu.CompilerParams(
            dimension_semantics=("arbitrary",)),
    )(packed, wb)
    return out


def build_product_features(products, max_product_type):
    # TODO(synk): python-dict parsing is host-side glue, no Pallas equivalent.
    feats = []
    for p in products:
        length, width = p["size"]
        quantity = p["quantity"]
        feats.append([length, width, quantity])
        feats.append([width, length, quantity])
    while len(feats) < 2 * max_product_type:
        feats.append([0.0, 0.0, 0.0])
    feats = np.array(feats[:2 * max_product_type], dtype=np.float32)
    return jnp.asarray(feats).reshape(1, -1)


def state_encoder_forward(stocks, products, weights, biases, max_product_type):
    cnn_out = cnn_encode(stocks, weights, biases)
    prod = build_product_features(products, max_product_type)
    return jnp.concatenate([cnn_out, prod], axis=1)


if __name__ == "__main__":
    key = jax.random.PRNGKey(0)
    num_sheet, max_w, max_h = 2, 16, 16
    max_product_type, max_product_per_type = 4, 10

    k1, k2, k3 = jax.random.split(key, 3)
    # three conv layers, each torch weight (1,1,3,3) + bias (1,), stacked.
    weights = jax.random.uniform(k1, (3, 3, 3), jnp.float32, -1.0 / 3.0, 1.0 / 3.0)
    biases = jax.random.uniform(k2, (3,), jnp.float32, -1.0 / 3.0, 1.0 / 3.0)

    # stocks: -1 = empty cell, >=0 = occupied
    stocks = jax.random.randint(k3, (num_sheet, max_h, max_w), -1, 3)

    products = [
        {"size": (4.0, 5.0), "quantity": 3.0},
        {"size": (2.0, 7.0), "quantity": 1.0},
        {"size": (6.0, 3.0), "quantity": 2.0},
    ]

    out = state_encoder_forward(stocks, products, weights, biases, max_product_type)
    out = jax.block_until_ready(out)

    # ---- pure-JAX reference (lax.conv, HIGHEST precision) for validation ----
    binary = (stocks == -1).astype(jnp.float32)
    x = binary[:, None, :, :]                        # NCHW
    for l in range(3):
        x = lax.conv_general_dilated(
            x, weights[l].reshape(1, 1, 3, 3), window_strides=(2, 2),
            padding=((1, 1), (1, 1)), precision=lax.Precision.HIGHEST)
        x = jnp.maximum(x + biases[l], 0.0)
    cnn_ref = x.reshape(1, -1)
    ref = jnp.concatenate(
        [cnn_ref, build_product_features(products, max_product_type)], axis=1)

    h3 = _out_size(_out_size(_out_size(max_h)))
    w3 = _out_size(_out_size(_out_size(max_w)))
    assert out.shape == (1, num_sheet * h3 * w3 + 6 * max_product_type)
    np.testing.assert_allclose(np.asarray(out), np.asarray(ref),
                               rtol=1e-3, atol=1e-3)
    print("KERNEL_OK")
</pallas_src>

<mosaic_0001>
module attributes {stable_mosaic.version = 11 : i64} {
  func.func @kernel(%arg0: i32, %arg1: memref<16x36xi32, #tpu.memory_space<vmem>>, %arg2: memref<30xf32, #tpu.memory_space<smem>>, %arg3: memref<1x8xf32, #tpu.memory_space<vmem>>) attributes {dimension_semantics = [#tpu.dimension_semantics<arbitrary>], iteration_bounds = array<i64: 1>, scalar_prefetch = 0 : i64, scratch_operands = 0 : i64, tpu.core_type = #tpu.core_type<tc>, window_params = [{pipeline_mode = #tpu.pipeline_mode<synchronous>, transform_indices = @transform_0, window_bounds = array<i64: 16, 36>}, {transform_indices = @transform_1, window_bounds = array<i64: 30>}, {pipeline_mode = #tpu.pipeline_mode<synchronous>, transform_indices = @transform_2, window_bounds = array<i64: 1, 8>}]} {
    %c0 = arith.constant 0 : index
    %c0_0 = arith.constant 0 : index
    %0 = vector.load %arg1[%c0, %c0_0] : memref<16x36xi32, #tpu.memory_space<vmem>>, vector<16x36xi32>
    %c-1_i32 = arith.constant -1 : i32
    %1 = vector.broadcast %c-1_i32 : i32 to vector<16x36xi32>
    %2 = arith.cmpi eq, %0, %1 : vector<16x36xi32>
    %3 = arith.extui %2 : vector<16x36xi1> to vector<16x36xi32>
    %4 = arith.sitofp %3 : vector<16x36xi32> to vector<16x36xf32>
    %c0_1 = arith.constant 0 : index
    %5 = memref.load %arg2[%c0_1] : memref<30xf32, #tpu.memory_space<smem>>
    %c1 = arith.constant 1 : index
    %6 = memref.load %arg2[%c1] : memref<30xf32, #tpu.memory_space<smem>>
    %c2 = arith.constant 2 : index
    %7 = memref.load %arg2[%c2] : memref<30xf32, #tpu.memory_space<smem>>
    %c3 = arith.constant 3 : index
    %8 = memref.load %arg2[%c3] : memref<30xf32, #tpu.memory_space<smem>>
    %c4 = arith.constant 4 : index
    %9 = memref.load %arg2[%c4] : memref<30xf32, #tpu.memory_space<smem>>
    %c5 = arith.constant 5 : index
    %10 = memref.load %arg2[%c5] : memref<30xf32, #tpu.memory_space<smem>>
    %c6 = arith.constant 6 : index
    %11 = memref.load %arg2[%c6] : memref<30xf32, #tpu.memory_space<smem>>
    %c7 = arith.constant 7 : index
    %12 = memref.load %arg2[%c7] : memref<30xf32, #tpu.memory_space<smem>>
    %c8 = arith.constant 8 : index
    %13 = memref.load %arg2[%c8] : memref<30xf32, #tpu.memory_space<smem>>
    %c27 = arith.constant 27 : index
    %14 = memref.load %arg2[%c27] : memref<30xf32, #tpu.memory_space<smem>>
    %15 = tpu.iota {dimensions = array<i32: 0>} : vector<8x16xi32>
    %16 = tpu.iota {dimensions = array<i32: 1>} : vector<8x16xi32>
    %c2_i32 = arith.constant 2 : i32
    %17 = vector.broadcast %c2_i32 : i32 to vector<8x16xi32>
    %18 = arith.muli %17, %15 : vector<8x16xi32>
    %c-1_i32_2 = arith.constant -1 : i32
    %19 = vector.broadcast %c-1_i32_2 : i32 to vector<8x16xi32>
    %20 = arith.addi %18, %19 : vector<8x16xi32>
    %21 = arith.cmpi eq, %16, %20 : vector<8x16xi32>
    %22 = arith.extui %21 : vector<8x16xi1> to vector<8x16xi32>
    %23 = arith.sitofp %22 : vector<8x16xi32> to vector<8x16xf32>
    %c2_i32_3 = arith.constant 2 : i32
    %24 = vector.broadcast %c2_i32_3 : i32 to vector<8x16xi32>
    %25 = arith.muli %24, %15 : vector<8x16xi32>
    %c0_i32 = arith.constant 0 : i32
    %26 = vector.broadcast %c0_i32 : i32 to vector<8x16xi32>
    %27 = arith.addi %25, %26 : vector<8x16xi32>
    %28 = arith.cmpi eq, %16, %27 : vector<8x16xi32>
    %29 = arith.extui %28 : vector<8x16xi1> to vector<8x16xi32>
    %30 = arith.sitofp %29 : vector<8x16xi32> to vector<8x16xf32>
    %c2_i32_4 = arith.constant 2 : i32
    %31 = vector.broadcast %c2_i32_4 : i32 to vector<8x16xi32>
    %32 = arith.muli %31, %15 : vector<8x16xi32>
    %c1_i32 = arith.constant 1 : i32
    %33 = vector.broadcast %c1_i32 : i32 to vector<8x16xi32>
    %34 = arith.addi %32, %33 : vector<8x16xi32>
    %35 = arith.cmpi eq, %16, %34 : vector<8x16xi32>
    %36 = arith.extui %35 : vector<8x16xi1> to vector<8x16xi32>
    %37 = arith.sitofp %36 : vector<8x16xi32> to vector<8x16xf32>
    %38 = vector.broadcast %5 : f32 to vector<8x16xf32>
    %39 = arith.mulf %38, %23 : vector<8x16xf32>
    %40 = vector.broadcast %8 : f32 to vector<8x16xf32>
    %41 = arith.mulf %40, %30 : vector<8x16xf32>
    %42 = arith.addf %39, %41 : vector<8x16xf32>
    %43 = vector.broadcast %11 : f32 to vector<8x16xf32>
    %44 = arith.mulf %43, %37 : vector<8x16xf32>
    %45 = arith.addf %42, %44 : vector<8x16xf32>
    %46 = vector.extract_strided_slice %4 {offsets = [0, 0], sizes = [16, 34], strides = [1, 1]} : vector<16x36xf32> to vector<16x34xf32>
    %cst = arith.constant dense<0.000000e+00> : vector<8x34xf32>
    %47 = tpu.matmul %45, %46, %cst {dimension_numbers = #tpu.dot_dimension_numbers<[1], [0], [0], [1], [0, 0, 1, 1], [], []>, precision = #tpu.contract_precision<fp32>} : vector<8x16xf32>, vector<16x34xf32>, vector<8x34xf32> -> vector<8x34xf32>
    %48 = vector.broadcast %6 : f32 to vector<8x16xf32>
    %49 = arith.mulf %48, %23 : vector<8x16xf32>
    %50 = vector.broadcast %9 : f32 to vector<8x16xf32>
    %51 = arith.mulf %50, %30 : vector<8x16xf32>
    %52 = arith.addf %49, %51 : vector<8x16xf32>
    %53 = vector.broadcast %12 : f32 to vector<8x16xf32>
    %54 = arith.mulf %53, %37 : vector<8x16xf32>
    %55 = arith.addf %52, %54 : vector<8x16xf32>
    %56 = vector.extract_strided_slice %4 {offsets = [0, 1], sizes = [16, 34], strides = [1, 1]} : vector<16x36xf32> to vector<16x34xf32>
    %cst_5 = arith.constant dense<0.000000e+00> : vector<8x34xf32>
    %57 = tpu.matmul %55, %56, %cst_5 {dimension_numbers = #tpu.dot_dimension_numbers<[1], [0], [0], [1], [0, 0, 1, 1], [], []>, precision = #tpu.contract_precision<fp32>} : vector<8x16xf32>, vector<16x34xf32>, vector<8x34xf32> -> vector<8x34xf32>
    %58 = arith.addf %47, %57 : vector<8x34xf32>
    %59 = vector.broadcast %7 : f32 to vector<8x16xf32>
    %60 = arith.mulf %59, %23 : vector<8x16xf32>
    %61 = vector.broadcast %10 : f32 to vector<8x16xf32>
    %62 = arith.mulf %61, %30 : vector<8x16xf32>
    %63 = arith.addf %60, %62 : vector<8x16xf32>
    %64 = vector.broadcast %13 : f32 to vector<8x16xf32>
    %65 = arith.mulf %64, %37 : vector<8x16xf32>
    %66 = arith.addf %63, %65 : vector<8x16xf32>
    %67 = vector.extract_strided_slice %4 {offsets = [0, 2], sizes = [16, 34], strides = [1, 1]} : vector<16x36xf32> to vector<16x34xf32>
    %cst_6 = arith.constant dense<0.000000e+00> : vector<8x34xf32>
    %68 = tpu.matmul %66, %67, %cst_6 {dimension_numbers = #tpu.dot_dimension_numbers<[1], [0], [0], [1], [0, 0, 1, 1], [], []>, precision = #tpu.contract_precision<fp32>} : vector<8x16xf32>, vector<16x34xf32>, vector<8x34xf32> -> vector<8x34xf32>
    %69 = arith.addf %58, %68 : vector<8x34xf32>
    %70 = tpu.iota {dimensions = array<i32: 0>} : vector<34x20xi32>
    %71 = tpu.iota {dimensions = array<i32: 1>} : vector<34x20xi32>
    %72 = tpu.iota {dimensions = array<i32: 1>} : vector<1x20xi32>
    %cst_7 = arith.constant 0.000000e+00 : f32
    %73 = vector.broadcast %cst_7 : f32 to vector<34x20xf32>
    %cst_8 = arith.constant 0.000000e+00 : f32
    %74 = vector.broadcast %cst_8 : f32 to vector<1x20xf32>
    %c1_i32_9 = arith.constant 1 : i32
    %75 = vector.broadcast %c1_i32_9 : i32 to vector<34x20xi32>
    %76 = arith.cmpi sge, %71, %75 : vector<34x20xi32>
    %c9_i32 = arith.constant 9 : i32
    %77 = vector.broadcast %c9_i32 : i32 to vector<34x20xi32>
    %78 = arith.cmpi slt, %71, %77 : vector<34x20xi32>
    %79 = arith.andi %76, %78 : vector<34x20xi1>
    %c1_i32_10 = arith.constant 1 : i32
    %80 = vector.broadcast %c1_i32_10 : i32 to vector<34x20xi32>
    %81 = arith.subi %71, %80 : vector<34x20xi32>
    %c2_i32_11 = arith.constant 2 : i32
    %82 = vector.broadcast %c2_i32_11 : i32 to vector<34x20xi32>
    %83 = arith.muli %82, %81 : vector<34x20xi32>
    %c0_i32_12 = arith.constant 0 : i32
    %84 = vector.broadcast %c0_i32_12 : i32 to vector<34x20xi32>
    %85 = arith.addi %84, %83 : vector<34x20xi32>
    %86 = arith.cmpi eq, %70, %85 : vector<34x20xi32>
    %87 = arith.andi %79, %86 : vector<34x20xi1>
    %88 = arith.extui %87 : vector<34x20xi1> to vector<34x20xi32>
    %89 = arith.sitofp %88 : vector<34x20xi32> to vector<34x20xf32>
    %90 = arith.addf %73, %89 : vector<34x20xf32>
    %c1_i32_13 = arith.constant 1 : i32
    %91 = vector.broadcast %c1_i32_13 : i32 to vector<1x20xi32>
    %92 = arith.cmpi sge, %72, %91 : vector<1x20xi32>
    %c9_i32_14 = arith.constant 9 : i32
    %93 = vector.broadcast %c9_i32_14 : i32 to vector<1x20xi32>
    %94 = arith.cmpi slt, %72, %93 : vector<1x20xi32>
    %95 = arith.andi %92, %94 : vector<1x20xi1>
    %96 = arith.extui %95 : vector<1x20xi1> to vector<1x20xi32>
    %97 = arith.sitofp %96 : vector<1x20xi32> to vector<1x20xf32>
    %98 = arith.addf %74, %97 : vector<1x20xf32>
    %c11_i32 = arith.constant 11 : i32
    %99 = vector.broadcast %c11_i32 : i32 to vector<34x20xi32>
    %100 = arith.cmpi sge, %71, %99 : vector<34x20xi32>
    %c19_i32 = arith.constant 19 : i32
    %101 = vector.broadcast %c19_i32 : i32 to vector<34x20xi32>
    %102 = arith.cmpi slt, %71, %101 : vector<34x20xi32>
    %103 = arith.andi %100, %102 : vector<34x20xi1>
    %c11_i32_15 = arith.constant 11 : i32
    %104 = vector.broadcast %c11_i32_15 : i32 to vector<34x20xi32>
    %105 = arith.subi %71, %104 : vector<34x20xi32>
    %c2_i32_16 = arith.constant 2 : i32
    %106 = vector.broadcast %c2_i32_16 : i32 to vector<34x20xi32>
    %107 = arith.muli %106, %105 : vector<34x20xi32>
    %c18_i32 = arith.constant 18 : i32
    %108 = vector.broadcast %c18_i32 : i32 to vector<34x20xi32>
    %109 = arith.addi %108, %107 : vector<34x20xi32>
    %110 = arith.cmpi eq, %70, %109 : vector<34x20xi32>
    %111 = arith.andi %103, %110 : vector<34x20xi1>
    %112 = arith.extui %111 : vector<34x20xi1> to vector<34x20xi32>
    %113 = arith.sitofp %112 : vector<34x20xi32> to vector<34x20xf32>
    %114 = arith.addf %90, %113 : vector<34x20xf32>
    %c11_i32_17 = arith.constant 11 : i32
    %115 = vector.broadcast %c11_i32_17 : i32 to vector<1x20xi32>
    %116 = arith.cmpi sge, %72, %115 : vector<1x20xi32>
    %c19_i32_18 = arith.constant 19 : i32
    %117 = vector.broadcast %c19_i32_18 : i32 to vector<1x20xi32>
    %118 = arith.cmpi slt, %72, %117 : vector<1x20xi32>
    %119 = arith.andi %116, %118 : vector<1x20xi1>
    %120 = arith.extui %119 : vector<1x20xi1> to vector<1x20xi32>
    %121 = arith.sitofp %120 : vector<1x20xi32> to vector<1x20xf32>
    %122 = arith.addf %98, %121 : vector<1x20xf32>
    %cst_19 = arith.constant dense<0.000000e+00> : vector<8x20xf32>
    %123 = tpu.matmul %69, %114, %cst_19 {dimension_numbers = #tpu.dot_dimension_numbers<[1], [0], [0], [1], [0, 0, 1, 1], [], []>, precision = #tpu.contract_precision<fp32>} : vector<8x34xf32>, vector<34x20xf32>, vector<8x20xf32> -> vector<8x20xf32>
    %124 = vector.broadcast %14 : f32 to vector<1x20xf32>
    %125 = arith.mulf %124, %122 : vector<1x20xf32>
    %126 = vector.broadcast %125 : vector<1x20xf32> to vector<8x20xf32>
    %127 = arith.addf %123, %126 : vector<8x20xf32>
    %cst_20 = arith.constant 0.000000e+00 : f32
    %128 = vector.broadcast %cst_20 : f32 to vector<8x20xf32>
    %129 = arith.maximumf %127, %128 : vector<8x20xf32>
    %c9 = arith.constant 9 : index
    %130 = memref.load %arg2[%c9] : memref<30xf32, #tpu.memory_space<smem>>
    %c10 = arith.constant 10 : index
    %131 = memref.load %arg2[%c10] : memref<30xf32, #tpu.memory_space<smem>>
    %c11 = arith.constant 11 : index
    %132 = memref.load %arg2[%c11] : memref<30xf32, #tpu.memory_space<smem>>
    %c12 = arith.constant 12 : index
    %133 = memref.load %arg2[%c12] : memref<30xf32, #tpu.memory_space<smem>>
    %c13 = arith.constant 13 : index
    %134 = memref.load %arg2[%c13] : memref<30xf32, #tpu.memory_space<smem>>
    %c14 = arith.constant 14 : index
    %135 = memref.load %arg2[%c14] : memref<30xf32, #tpu.memory_space<smem>>
    %c15 = arith.constant 15 : index
    %136 = memref.load %arg2[%c15] : memref<30xf32, #tpu.memory_space<smem>>
    %c16 = arith.constant 16 : index
    %137 = memref.load %arg2[%c16] : memref<30xf32, #tpu.memory_space<smem>>
    %c17 = arith.constant 17 : index
    %138 = memref.load %arg2[%c17] : memref<30xf32, #tpu.memory_space<smem>>
    %c28 = arith.constant 28 : index
    %139 = memref.load %arg2[%c28] : memref<30xf32, #tpu.memory_space<smem>>
    %140 = tpu.iota {dimensions = array<i32: 0>} : vector<4x8xi32>
    %141 = tpu.iota {dimensions = array<i32: 1>} : vector<4x8xi32>
    %c2_i32_21 = arith.constant 2 : i32
    %142 = vector.broadcast %c2_i32_21 : i32 to vector<4x8xi32>
    %143 = arith.muli %142, %140 : vector<4x8xi32>
    %c-1_i32_22 = arith.constant -1 : i32
    %144 = vector.broadcast %c-1_i32_22 : i32 to vector<4x8xi32>
    %145 = arith.addi %143, %144 : vector<4x8xi32>
    %146 = arith.cmpi eq, %141, %145 : vector<4x8xi32>
    %147 = arith.extui %146 : vector<4x8xi1> to vector<4x8xi32>
    %148 = arith.sitofp %147 : vector<4x8xi32> to vector<4x8xf32>
    %c2_i32_23 = arith.constant 2 : i32
    %149 = vector.broadcast %c2_i32_23 : i32 to vector<4x8xi32>
    %150 = arith.muli %149, %140 : vector<4x8xi32>
    %c0_i32_24 = arith.constant 0 : i32
    %151 = vector.broadcast %c0_i32_24 : i32 to vector<4x8xi32>
    %152 = arith.addi %150, %151 : vector<4x8xi32>
    %153 = arith.cmpi eq, %141, %152 : vector<4x8xi32>
    %154 = arith.extui %153 : vector<4x8xi1> to vector<4x8xi32>
    %155 = arith.sitofp %154 : vector<4x8xi32> to vector<4x8xf32>
    %c2_i32_25 = arith.constant 2 : i32
    %156 = vector.broadcast %c2_i32_25 : i32 to vector<4x8xi32>
    %157 = arith.muli %156, %140 : vector<4x8xi32>
    %c1_i32_26 = arith.constant 1 : i32
    %158 = vector.broadcast %c1_i32_26 : i32 to vector<4x8xi32>
    %159 = arith.addi %157, %158 : vector<4x8xi32>
    %160 = arith.cmpi eq, %141, %159 : vector<4x8xi32>
    %161 = arith.extui %160 : vector<4x8xi1> to vector<4x8xi32>
    %162 = arith.sitofp %161 : vector<4x8xi32> to vector<4x8xf32>
    %163 = vector.broadcast %130 : f32 to vector<4x8xf32>
    %164 = arith.mulf %163, %148 : vector<4x8xf32>
    %165 = vector.broadcast %133 : f32 to vector<4x8xf32>
    %166 = arith.mulf %165, %155 : vector<4x8xf32>
    %167 = arith.addf %164, %166 : vector<4x8xf32>
    %168 = vector.broadcast %136 : f32 to vector<4x8xf32>
    %169 = arith.mulf %168, %162 : vector<4x8xf32>
    %170 = arith.addf %167, %169 : vector<4x8xf32>
    %171 = vector.extract_strided_slice %129 {offsets = [0, 0], sizes = [8, 18], strides = [1, 1]} : vector<8x20xf32> to vector<8x18xf32>
    %cst_27 = arith.constant dense<0.000000e+00> : vector<4x18xf32>
    %172 = tpu.matmul %170, %171, %cst_27 {dimension_numbers = #tpu.dot_dimension_numbers<[1], [0], [0], [1], [0, 0, 1, 1], [], []>, precision = #tpu.contract_precision<fp32>} : vector<4x8xf32>, vector<8x18xf32>, vector<4x18xf32> -> vector<4x18xf32>
    %173 = vector.broadcast %131 : f32 to vector<4x8xf32>
    %174 = arith.mulf %173, %148 : vector<4x8xf32>
    %175 = vector.broadcast %134 : f32 to vector<4x8xf32>
    %176 = arith.mulf %175, %155 : vector<4x8xf32>
    %177 = arith.addf %174, %176 : vector<4x8xf32>
    %178 = vector.broadcast %137 : f32 to vector<4x8xf32>
    %179 = arith.mulf %178, %162 : vector<4x8xf32>
    %180 = arith.addf %177, %179 : vector<4x8xf32>
    %181 = vector.extract_strided_slice %129 {offsets = [0, 1], sizes = [8, 18], strides = [1, 1]} : vector<8x20xf32> to vector<8x18xf32>
    %cst_28 = arith.constant dense<0.000000e+00> : vector<4x18xf32>
    %182 = tpu.matmul %180, %181, %cst_28 {dimension_numbers = #tpu.dot_dimension_numbers<[1], [0], [0], [1], [0, 0, 1, 1], [], []>, precision = #tpu.contract_precision<fp32>} : vector<4x8xf32>, vector<8x18xf32>, vector<4x18xf32> -> vector<4x18xf32>
    %183 = arith.addf %172, %182 : vector<4x18xf32>
    %184 = vector.broadcast %132 : f32 to vector<4x8xf32>
    %185 = arith.mulf %184, %148 : vector<4x8xf32>
    %186 = vector.broadcast %135 : f32 to vector<4x8xf32>
    %187 = arith.mulf %186, %155 : vector<4x8xf32>
    %188 = arith.addf %185, %187 : vector<4x8xf32>
    %189 = vector.broadcast %138 : f32 to vector<4x8xf32>
    %190 = arith.mulf %189, %162 : vector<4x8xf32>
    %191 = arith.addf %188, %190 : vector<4x8xf32>
    %192 = vector.extract_strided_slice %129 {offsets = [0, 2], sizes = [8, 18], strides = [1, 1]} : vector<8x20xf32> to vector<8x18xf32>
    %cst_29 = arith.constant dense<0.000000e+00> : vector<4x18xf32>
    %193 = tpu.matmul %191, %192, %cst_29 {dimension_numbers = #tpu.dot_dimension_numbers<[1], [0], [0], [1], [0, 0, 1, 1], [], []>, precision = #tpu.contract_precision<fp32>} : vector<4x8xf32>, vector<8x18xf32>, vector<4x18xf32> -> vector<4x18xf32>
    %194 = arith.addf %183, %193 : vector<4x18xf32>
    %195 = tpu.iota {dimensions = array<i32: 0>} : vector<18x12xi32>
    %196 = tpu.iota {dimensions = array<i32: 1>} : vector<18x12xi32>
    %197 = tpu.iota {dimensions = array<i32: 1>} : vector<1x12xi32>
    %cst_30 = arith.constant 0.000000e+00 : f32
    %198 = vector.broadcast %cst_30 : f32 to vector<18x12xf32>
    %cst_31 = arith.constant 0.000000e+00 : f32
    %199 = vector.broadcast %cst_31 : f32 to vector<1x12xf32>
    %c1_i32_32 = arith.constant 1 : i32
    %200 = vector.broadcast %c1_i32_32 : i32 to vector<18x12xi32>
    %201 = arith.cmpi sge, %196, %200 : vector<18x12xi32>
    %c5_i32 = arith.constant 5 : i32
    %202 = vector.broadcast %c5_i32 : i32 to vector<18x12xi32>
    %203 = arith.cmpi slt, %196, %202 : vector<18x12xi32>
    %204 = arith.andi %201, %203 : vector<18x12xi1>
    %c1_i32_33 = arith.constant 1 : i32
    %205 = vector.broadcast %c1_i32_33 : i32 to vector<18x12xi32>
    %206 = arith.subi %196, %205 : vector<18x12xi32>
    %c2_i32_34 = arith.constant 2 : i32
    %207 = vector.broadcast %c2_i32_34 : i32 to vector<18x12xi32>
    %208 = arith.muli %207, %206 : vector<18x12xi32>
    %c0_i32_35 = arith.constant 0 : i32
    %209 = vector.broadcast %c0_i32_35 : i32 to vector<18x12xi32>
    %210 = arith.addi %209, %208 : vector<18x12xi32>
    %211 = arith.cmpi eq, %195, %210 : vector<18x12xi32>
    %212 = arith.andi %204, %211 : vector<18x12xi1>
    %213 = arith.extui %212 : vector<18x12xi1> to vector<18x12xi32>
    %214 = arith.sitofp %213 : vector<18x12xi32> to vector<18x12xf32>
    %215 = arith.addf %198, %214 : vector<18x12xf32>
    %c1_i32_36 = arith.constant 1 : i32
    %216 = vector.broadcast %c1_i32_36 : i32 to vector<1x12xi32>
    %217 = arith.cmpi sge, %197, %216 : vector<1x12xi32>
    %c5_i32_37 = arith.constant 5 : i32
    %218 = vector.broadcast %c5_i32_37 : i32 to vector<1x12xi32>
    %219 = arith.cmpi slt, %197, %218 : vector<1x12xi32>
    %220 = arith.andi %217, %219 : vector<1x12xi1>
    %221 = arith.extui %220 : vector<1x12xi1> to vector<1x12xi32>
    %222 = arith.sitofp %221 : vector<1x12xi32> to vector<1x12xf32>
    %223 = arith.addf %199, %222 : vector<1x12xf32>
    %c7_i32 = arith.constant 7 : i32
    %224 = vector.broadcast %c7_i32 : i32 to vector<18x12xi32>
    %225 = arith.cmpi sge, %196, %224 : vector<18x12xi32>
    %c11_i32_38 = arith.constant 11 : i32
    %226 = vector.broadcast %c11_i32_38 : i32 to vector<18x12xi32>
    %227 = arith.cmpi slt, %196, %226 : vector<18x12xi32>
    %228 = arith.andi %225, %227 : vector<18x12xi1>
    %c7_i32_39 = arith.constant 7 : i32
    %229 = vector.broadcast %c7_i32_39 : i32 to vector<18x12xi32>
    %230 = arith.subi %196, %229 : vector<18x12xi32>
    %c2_i32_40 = arith.constant 2 : i32
    %231 = vector.broadcast %c2_i32_40 : i32 to vector<18x12xi32>
    %232 = arith.muli %231, %230 : vector<18x12xi32>
    %c10_i32 = arith.constant 10 : i32
    %233 = vector.broadcast %c10_i32 : i32 to vector<18x12xi32>
    %234 = arith.addi %233, %232 : vector<18x12xi32>
    %235 = arith.cmpi eq, %195, %234 : vector<18x12xi32>
    %236 = arith.andi %228, %235 : vector<18x12xi1>
    %237 = arith.extui %236 : vector<18x12xi1> to vector<18x12xi32>
    %238 = arith.sitofp %237 : vector<18x12xi32> to vector<18x12xf32>
    %239 = arith.addf %215, %238 : vector<18x12xf32>
    %c7_i32_41 = arith.constant 7 : i32
    %240 = vector.broadcast %c7_i32_41 : i32 to vector<1x12xi32>
    %241 = arith.cmpi sge, %197, %240 : vector<1x12xi32>
    %c11_i32_42 = arith.constant 11 : i32
    %242 = vector.broadcast %c11_i32_42 : i32 to vector<1x12xi32>
    %243 = arith.cmpi slt, %197, %242 : vector<1x12xi32>
    %244 = arith.andi %241, %243 : vector<1x12xi1>
    %245 = arith.extui %244 : vector<1x12xi1> to vector<1x12xi32>
    %246 = arith.sitofp %245 : vector<1x12xi32> to vector<1x12xf32>
    %247 = arith.addf %223, %246 : vector<1x12xf32>
    %cst_43 = arith.constant dense<0.000000e+00> : vector<4x12xf32>
    %248 = tpu.matmul %194, %239, %cst_43 {dimension_numbers = #tpu.dot_dimension_numbers<[1], [0], [0], [1], [0, 0, 1, 1], [], []>, precision = #tpu.contract_precision<fp32>} : vector<4x18xf32>, vector<18x12xf32>, vector<4x12xf32> -> vector<4x12xf32>
    %249 = vector.broadcast %139 : f32 to vector<1x12xf32>
    %250 = arith.mulf %249, %247 : vector<1x12xf32>
    %251 = vector.broadcast %250 : vector<1x12xf32> to vector<4x12xf32>
    %252 = arith.addf %248, %251 : vector<4x12xf32>
    %cst_44 = arith.constant 0.000000e+00 : f32
    %253 = vector.broadcast %cst_44 : f32 to vector<4x12xf32>
    %254 = arith.maximumf %252, %253 : vector<4x12xf32>
    %c18 = arith.constant 18 : index
    %255 = memref.load %arg2[%c18] : memref<30xf32, #tpu.memory_space<smem>>
    %c19 = arith.constant 19 : index
    %256 = memref.load %arg2[%c19] : memref<30xf32, #tpu.memory_space<smem>>
    %c20 = arith.constant 20 : index
    %257 = memref.load %arg2[%c20] : memref<30xf32, #tpu.memory_space<smem>>
    %c21 = arith.constant 21 : index
    %258 = memref.load %arg2[%c21] : memref<30xf32, #tpu.memory_space<smem>>
    %c22 = arith.constant 22 : index
    %259 = memref.load %arg2[%c22] : memref<30xf32, #tpu.memory_space<smem>>
    %c23 = arith.constant 23 : index
    %260 = memref.load %arg2[%c23] : memref<30xf32, #tpu.memory_space<smem>>
    %c24 = arith.constant 24 : index
    %261 = memref.load %arg2[%c24] : memref<30xf32, #tpu.memory_space<smem>>
    %c25 = arith.constant 25 : index
    %262 = memref.load %arg2[%c25] : memref<30xf32, #tpu.memory_space<smem>>
    %c26 = arith.constant 26 : index
    %263 = memref.load %arg2[%c26] : memref<30xf32, #tpu.memory_space<smem>>
    %c29 = arith.constant 29 : index
    %264 = memref.load %arg2[%c29] : memref<30xf32, #tpu.memory_space<smem>>
    %265 = tpu.iota {dimensions = array<i32: 0>} : vector<2x4xi32>
    %266 = tpu.iota {dimensions = array<i32: 1>} : vector<2x4xi32>
    %c2_i32_45 = arith.constant 2 : i32
    %267 = vector.broadcast %c2_i32_45 : i32 to vector<2x4xi32>
    %268 = arith.muli %267, %265 : vector<2x4xi32>
    %c-1_i32_46 = arith.constant -1 : i32
    %269 = vector.broadcast %c-1_i32_46 : i32 to vector<2x4xi32>
    %270 = arith.addi %268, %269 : vector<2x4xi32>
    %271 = arith.cmpi eq, %266, %270 : vector<2x4xi32>
    %272 = arith.extui %271 : vector<2x4xi1> to vector<2x4xi32>
    %273 = arith.sitofp %272 : vector<2x4xi32> to vector<2x4xf32>
    %c2_i32_47 = arith.constant 2 : i32
    %274 = vector.broadcast %c2_i32_47 : i32 to vector<2x4xi32>
    %275 = arith.muli %274, %265 : vector<2x4xi32>
    %c0_i32_48 = arith.constant 0 : i32
    %276 = vector.broadcast %c0_i32_48 : i32 to vector<2x4xi32>
    %277 = arith.addi %275, %276 : vector<2x4xi32>
    %278 = arith.cmpi eq, %266, %277 : vector<2x4xi32>
    %279 = arith.extui %278 : vector<2x4xi1> to vector<2x4xi32>
    %280 = arith.sitofp %279 : vector<2x4xi32> to vector<2x4xf32>
    %c2_i32_49 = arith.constant 2 : i32
    %281 = vector.broadcast %c2_i32_49 : i32 to vector<2x4xi32>
    %282 = arith.muli %281, %265 : vector<2x4xi32>
    %c1_i32_50 = arith.constant 1 : i32
    %283 = vector.broadcast %c1_i32_50 : i32 to vector<2x4xi32>
    %284 = arith.addi %282, %283 : vector<2x4xi32>
    %285 = arith.cmpi eq, %266, %284 : vector<2x4xi32>
    %286 = arith.extui %285 : vector<2x4xi1> to vector<2x4xi32>
    %287 = arith.sitofp %286 : vector<2x4xi32> to vector<2x4xf32>
    %288 = vector.broadcast %255 : f32 to vector<2x4xf32>
    %289 = arith.mulf %288, %273 : vector<2x4xf32>
    %290 = vector.broadcast %258 : f32 to vector<2x4xf32>
    %291 = arith.mulf %290, %280 : vector<2x4xf32>
    %292 = arith.addf %289, %291 : vector<2x4xf32>
    %293 = vector.broadcast %261 : f32 to vector<2x4xf32>
    %294 = arith.mulf %293, %287 : vector<2x4xf32>
    %295 = arith.addf %292, %294 : vector<2x4xf32>
    %296 = vector.extract_strided_slice %254 {offsets = [0, 0], sizes = [4, 10], strides = [1, 1]} : vector<4x12xf32> to vector<4x10xf32>
    %cst_51 = arith.constant dense<0.000000e+00> : vector<2x10xf32>
    %297 = tpu.matmul %295, %296, %cst_51 {dimension_numbers = #tpu.dot_dimension_numbers<[1], [0], [0], [1], [0, 0, 1, 1], [], []>, precision = #tpu.contract_precision<fp32>} : vector<2x4xf32>, vector<4x10xf32>, vector<2x10xf32> -> vector<2x10xf32>
    %298 = vector.broadcast %256 : f32 to vector<2x4xf32>
    %299 = arith.mulf %298, %273 : vector<2x4xf32>
    %300 = vector.broadcast %259 : f32 to vector<2x4xf32>
    %301 = arith.mulf %300, %280 : vector<2x4xf32>
    %302 = arith.addf %299, %301 : vector<2x4xf32>
    %303 = vector.broadcast %262 : f32 to vector<2x4xf32>
    %304 = arith.mulf %303, %287 : vector<2x4xf32>
    %305 = arith.addf %302, %304 : vector<2x4xf32>
    %306 = vector.extract_strided_slice %254 {offsets = [0, 1], sizes = [4, 10], strides = [1, 1]} : vector<4x12xf32> to vector<4x10xf32>
    %cst_52 = arith.constant dense<0.000000e+00> : vector<2x10xf32>
    %307 = tpu.matmul %305, %306, %cst_52 {dimension_numbers = #tpu.dot_dimension_numbers<[1], [0], [0], [1], [0, 0, 1, 1], [], []>, precision = #tpu.contract_precision<fp32>} : vector<2x4xf32>, vector<4x10xf32>, vector<2x10xf32> -> vector<2x10xf32>
    %308 = arith.addf %297, %307 : vector<2x10xf32>
    %309 = vector.broadcast %257 : f32 to vector<2x4xf32>
    %310 = arith.mulf %309, %273 : vector<2x4xf32>
    %311 = vector.broadcast %260 : f32 to vector<2x4xf32>
    %312 = arith.mulf %311, %280 : vector<2x4xf32>
    %313 = arith.addf %310, %312 : vector<2x4xf32>
    %314 = vector.broadcast %263 : f32 to vector<2x4xf32>
    %315 = arith.mulf %314, %287 : vector<2x4xf32>
    %316 = arith.addf %313, %315 : vector<2x4xf32>
    %317 = vector.extract_strided_slice %254 {offsets = [0, 2], sizes = [4, 10], strides = [1, 1]} : vector<4x12xf32> to vector<4x10xf32>
    %cst_53 = arith.constant dense<0.000000e+00> : vector<2x10xf32>
    %318 = tpu.matmul %316, %317, %cst_53 {dimension_numbers = #tpu.dot_dimension_numbers<[1], [0], [0], [1], [0, 0, 1, 1], [], []>, precision = #tpu.contract_precision<fp32>} : vector<2x4xf32>, vector<4x10xf32>, vector<2x10xf32> -> vector<2x10xf32>
    %319 = arith.addf %308, %318 : vector<2x10xf32>
    %320 = tpu.iota {dimensions = array<i32: 0>} : vector<10x8xi32>
    %321 = tpu.iota {dimensions = array<i32: 1>} : vector<10x8xi32>
    %cst_54 = arith.constant 0.000000e+00 : f32
    %322 = vector.broadcast %cst_54 : f32 to vector<1x8xf32>
    %cst_55 = arith.constant 0.000000e+00 : f32
    %323 = vector.broadcast %cst_55 : f32 to vector<10x8xf32>
    %c0_i32_56 = arith.constant 0 : i32
    %324 = vector.broadcast %c0_i32_56 : i32 to vector<10x8xi32>
    %325 = arith.cmpi sge, %321, %324 : vector<10x8xi32>
    %c2_i32_57 = arith.constant 2 : i32
    %326 = vector.broadcast %c2_i32_57 : i32 to vector<10x8xi32>
    %327 = arith.cmpi slt, %321, %326 : vector<10x8xi32>
    %328 = arith.andi %325, %327 : vector<10x8xi1>
    %c0_i32_58 = arith.constant 0 : i32
    %329 = vector.broadcast %c0_i32_58 : i32 to vector<10x8xi32>
    %330 = arith.subi %321, %329 : vector<10x8xi32>
    %c2_i32_59 = arith.constant 2 : i32
    %331 = vector.broadcast %c2_i32_59 : i32 to vector<10x8xi32>
    %332 = arith.muli %331, %330 : vector<10x8xi32>
    %c0_i32_60 = arith.constant 0 : i32
    %333 = vector.broadcast %c0_i32_60 : i32 to vector<10x8xi32>
    %334 = arith.addi %333, %332 : vector<10x8xi32>
    %335 = arith.cmpi eq, %320, %334 : vector<10x8xi32>
    %336 = arith.andi %328, %335 : vector<10x8xi1>
    %337 = arith.extui %336 : vector<10x8xi1> to vector<10x8xi32>
    %338 = arith.sitofp %337 : vector<10x8xi32> to vector<10x8xf32>
    %339 = arith.addf %323, %338 : vector<10x8xf32>
    %c4_i32 = arith.constant 4 : i32
    %340 = vector.broadcast %c4_i32 : i32 to vector<10x8xi32>
    %341 = arith.cmpi sge, %321, %340 : vector<10x8xi32>
    %c6_i32 = arith.constant 6 : i32
    %342 = vector.broadcast %c6_i32 : i32 to vector<10x8xi32>
    %343 = arith.cmpi slt, %321, %342 : vector<10x8xi32>
    %344 = arith.andi %341, %343 : vector<10x8xi1>
    %c4_i32_61 = arith.constant 4 : i32
    %345 = vector.broadcast %c4_i32_61 : i32 to vector<10x8xi32>
    %346 = arith.subi %321, %345 : vector<10x8xi32>
    %c2_i32_62 = arith.constant 2 : i32
    %347 = vector.broadcast %c2_i32_62 : i32 to vector<10x8xi32>
    %348 = arith.muli %347, %346 : vector<10x8xi32>
    %c6_i32_63 = arith.constant 6 : i32
    %349 = vector.broadcast %c6_i32_63 : i32 to vector<10x8xi32>
    %350 = arith.addi %349, %348 : vector<10x8xi32>
    %351 = arith.cmpi eq, %320, %350 : vector<10x8xi32>
    %352 = arith.andi %344, %351 : vector<10x8xi1>
    %353 = arith.extui %352 : vector<10x8xi1> to vector<10x8xi32>
    %354 = arith.sitofp %353 : vector<10x8xi32> to vector<10x8xf32>
    %355 = arith.addf %339, %354 : vector<10x8xf32>
    %356 = vector.extract_strided_slice %319 {offsets = [0, 0], sizes = [1, 10], strides = [1, 1]} : vector<2x10xf32> to vector<1x10xf32>
    %cst_64 = arith.constant dense<0.000000e+00> : vector<1x8xf32>
    %357 = tpu.matmul %356, %355, %cst_64 {dimension_numbers = #tpu.dot_dimension_numbers<[1], [0], [0], [1], [0, 0, 1, 1], [], []>, precision = #tpu.contract_precision<fp32>} : vector<1x10xf32>, vector<10x8xf32>, vector<1x8xf32> -> vector<1x8xf32>
    %358 = arith.addf %322, %357 : vector<1x8xf32>
    %cst_65 = arith.constant 0.000000e+00 : f32
    %359 = vector.broadcast %cst_65 : f32 to vector<10x8xf32>
    %c2_i32_66 = arith.constant 2 : i32
    %360 = vector.broadcast %c2_i32_66 : i32 to vector<10x8xi32>
    %361 = arith.cmpi sge, %321, %360 : vector<10x8xi32>
    %c4_i32_67 = arith.constant 4 : i32
    %362 = vector.broadcast %c4_i32_67 : i32 to vector<10x8xi32>
    %363 = arith.cmpi slt, %321, %362 : vector<10x8xi32>
    %364 = arith.andi %361, %363 : vector<10x8xi1>
    %c2_i32_68 = arith.constant 2 : i32
    %365 = vector.broadcast %c2_i32_68 : i32 to vector<10x8xi32>
    %366 = arith.subi %321, %365 : vector<10x8xi32>
    %c2_i32_69 = arith.constant 2 : i32
    %367 = vector.broadcast %c2_i32_69 : i32 to vector<10x8xi32>
    %368 = arith.muli %367, %366 : vector<10x8xi32>
    %c0_i32_70 = arith.constant 0 : i32
    %369 = vector.broadcast %c0_i32_70 : i32 to vector<10x8xi32>
    %370 = arith.addi %369, %368 : vector<10x8xi32>
    %371 = arith.cmpi eq, %320, %370 : vector<10x8xi32>
    %372 = arith.andi %364, %371 : vector<10x8xi1>
    %373 = arith.extui %372 : vector<10x8xi1> to vector<10x8xi32>
    %374 = arith.sitofp %373 : vector<10x8xi32> to vector<10x8xf32>
    %375 = arith.addf %359, %374 : vector<10x8xf32>
    %c6_i32_71 = arith.constant 6 : i32
    %376 = vector.broadcast %c6_i32_71 : i32 to vector<10x8xi32>
    %377 = arith.cmpi sge, %321, %376 : vector<10x8xi32>
    %c8_i32 = arith.constant 8 : i32
    %378 = vector.broadcast %c8_i32 : i32 to vector<10x8xi32>
    %379 = arith.cmpi slt, %321, %378 : vector<10x8xi32>
    %380 = arith.andi %377, %379 : vector<10x8xi1>
    %c6_i32_72 = arith.constant 6 : i32
    %381 = vector.broadcast %c6_i32_72 : i32 to vector<10x8xi32>
    %382 = arith.subi %321, %381 : vector<10x8xi32>
    %c2_i32_73 = arith.constant 2 : i32
    %383 = vector.broadcast %c2_i32_73 : i32 to vector<10x8xi32>
    %384 = arith.muli %383, %382 : vector<10x8xi32>
    %c6_i32_74 = arith.constant 6 : i32
    %385 = vector.broadcast %c6_i32_74 : i32 to vector<10x8xi32>
    %386 = arith.addi %385, %384 : vector<10x8xi32>
    %387 = arith.cmpi eq, %320, %386 : vector<10x8xi32>
    %388 = arith.andi %380, %387 : vector<10x8xi1>
    %389 = arith.extui %388 : vector<10x8xi1> to vector<10x8xi32>
    %390 = arith.sitofp %389 : vector<10x8xi32> to vector<10x8xf32>
    %391 = arith.addf %375, %390 : vector<10x8xf32>
    %392 = vector.extract_strided_slice %319 {offsets = [1, 0], sizes = [1, 10], strides = [1, 1]} : vector<2x10xf32> to vector<1x10xf32>
    %cst_75 = arith.constant dense<0.000000e+00> : vector<1x8xf32>
    %393 = tpu.matmul %392, %391, %cst_75 {dimension_numbers = #tpu.dot_dimension_numbers<[1], [0], [0], [1], [0, 0, 1, 1], [], []>, precision = #tpu.contract_precision<fp32>} : vector<1x10xf32>, vector<10x8xf32>, vector<1x8xf32> -> vector<1x8xf32>
    %394 = arith.addf %358, %393 : vector<1x8xf32>
    %395 = vector.broadcast %264 : f32 to vector<1x8xf32>
    %396 = arith.addf %394, %395 : vector<1x8xf32>
    %cst_76 = arith.constant 0.000000e+00 : f32
    %397 = vector.broadcast %cst_76 : f32 to vector<1x8xf32>
    %398 = arith.maximumf %396, %397 : vector<1x8xf32>
    %c0_77 = arith.constant 0 : index
    %c0_78 = arith.constant 0 : index
    %399 = vector.load %arg3[%c0_77, %c0_78] : memref<1x8xf32, #tpu.memory_space<vmem>>, vector<1x8xf32>
    tpu.vector_store %arg3[%c0_77, %c0_78], %398 {strides = array<i32>} : memref<1x8xf32, #tpu.memory_space<vmem>>, vector<1x8xf32>,
    return
  }
  func.func @transform_0(%arg0: i32) -> (i32, i32) {
    %c0_i32 = arith.constant 0 : i32
    %c0_i32_0 = arith.constant 0 : i32
    %c0_i32_1 = arith.constant 0 : i32
    return %c0_i32, %c0_i32_0 : i32, i32
  }
  func.func @transform_1(%arg0: i32) -> i32 {
    %c0_i32 = arith.constant 0 : i32
    %c0_i32_0 = arith.constant 0 : i32
    return %c0_i32 : i32
  }
  func.func @transform_2(%arg0: i32) -> (i32, i32) {
    %c0_i32 = arith.constant 0 : i32
    %c0_i32_0 = arith.constant 0 : i32
    %c0_i32_1 = arith.constant 0 : i32
    return %c0_i32, %c0_i32_0 : i32, i32
  }
}

</mosaic_0001>

<bundles_post_ra>
// kernel: tpu_custom_call.1
= control target key start
LH: loop header
LB: loop body
LE: loop exit
PB: predicated region body
PF: predicated region fallthrough
CT: control target
= control target key end

     0   :  { %7 = vsyncpa [#allocation3], 0  ;;  %s8168_s0 = inlined_call_operand.hbm [shape: s32[16,36], index: 0, kind: input, shape index: {}]   ;;  %s8169_s1 = inlined_call_operand.vmem [shape: f32[30], index: 1, kind: input, shape index: {}]   ;;  %s8170_s2 = inlined_call_operand.hbm [shape: f32[1,8], index: 2, kind: output, shape index: {}]  }
   0x1   :  { %8 = vsyncpa [#allocation5], 0 }
   0x2   :  { %9 = vsyncpa [#allocation4], 0  ;;  %s7569_s9 = smov [#allocation2]   ;;  %s28_s13 = sshll.u32 %s8169_s1, 4  ;;  %s29_s13 = int_to_ptr.vmem [resolvable:$true] %s28_s13 }
   0x3   :  { %s15_s10 = sshll.u32 %s7569_s9, 4  ;;  %s7507_s16 = scalar_lea.hbm %s8168_s0, 256  ;;  %s16_s10 = int_to_ptr.vmem [resolvable:$true] %s15_s10 }
   0x4   :  { %p7508_p0 = scmp.ne.s32.totalorder %s8168_s0, %s7507_s16  ;;  %p7511_p1 = scmp.lt.u32.totalorder %s7507_s16, %s8168_s0 }
   0x6   :  { %p7513_p2 = pnand %p7511_p1, %p7508_p0 }
   0x8   :  { %7516 = shalt.err (!%p7513_p2)
}
   0x9   :  { %s7517_s21 = scalar_lea.vmem %s16_s10, 256  ;;  %p7522_p4 = scmp.lt.s32.totalorder %s16_s10, %s16_s10 }
   0xa   :  { %p7518_p3 = scmp.ne.s32.totalorder %s16_s10, %s7517_s21  ;;  %p7523_p5 = scmp.lt.s32.totalorder %s7517_s21, %s7517_s21 }
   0xc   :  { %p7524_p6 = por %p7523_p5, %p7522_p4 }
   0xe   :  { %p7525_p7 = pnand %p7524_p6, %p7518_p3 }
  0x10   :  { %7528 = shalt.err (!%p7525_p7)
}
  0x11   :  { %s7570_s1 = smov 128   ;;  %s7571_s22 = smov 8  }
  0x12   :  { %21 = dma.hbm_to_vmem [thread:$0]  %s8168_s0, 256, %s16_s10, [#allocation3], %s7570_s1, %s7570_s1, %s7571_s22  }
  0x13   :  { %s7529_s25 = scalar_lea.vmem %s29_s13, 16  ;;  %p7534_p9 = scmp.lt.s32.totalorder %s29_s13, %s29_s13 }
  0x14   :  { %p7530_p8 = scmp.ne.s32.totalorder %s29_s13, %s7529_s25  ;;  %p7535_p10 = scmp.lt.s32.totalorder %s7529_s25, %s7529_s25 }
  0x16   :  { %p7536_p11 = por %p7535_p10, %p7534_p9 }
  0x18   :  { %p7537_p12 = pnand %p7536_p11, %p7530_p8 }
  0x1a   :  { %7540 = shalt.err (!%p7537_p12)
}
  0x1b   :  { %s7572_s26 = smov [#allocation6]  }
  0x1c   :  { %31 = dma.vmem_to_smem %s29_s13, 16, %s7572_s26, [#allocation5]  }
  0x1d   :  { %7563 = dma.done.wait [#allocation3], 256  }
  0x1e   :  { %7564 = vsyncadd [#allocation3], 4294967040 }
  0x1f   :  { %7565 = dma.done.wait [#allocation5], 16  }
  0x20   :  { %7566 = vsyncadd [#allocation5], 4294967280 }
  0x21   :  { %38 = sfence }
  0x22   :  { %v39_v0 = vld [vmem:[#allocation2] sm:$0xff]  ;;  %v40_v1 = vld [vmem:[#allocation2 + $0x8] sm:$0xff]  ;;  %v7573_v2 = vmov 0.0|0.0   ;;  %v7574_v3 = vmov 0.0   ;;  %vm7575_vm2 = vmmov 0   ;;  %s7576_s0 = smov 127   ;;  %v57_v18 = vlaneseq }
  0x23   :  { %vm41_vm0 = vcmp.eq.s32.totalorder %v39_v0, 4294967295  ;;  %vm42_vm1 = vcmp.eq.s32.totalorder %v40_v1, 4294967295  ;;  %7218 = vmatprep.subr.bf16.mxu0 %v7573_v2  ;;  %7272 = vmatprep.subr.bf16.mxu1 %v7573_v2  ;;  %s7577_s27 = smov 126   ;;  %s6402_s28 = sld [smem:[#allocation6 + $0x1]]  ;;  %vm97_vm7 = vcmask 130048  }
  0x24   :  { %v6400_v4 = vsel %vm41_vm0, 1.0, %v7574_v3  ;;  %v6401_v5 = vsel %vm42_vm1, 1.0, %v7574_v3  ;;  %6700 = vmatprep.mubr.msk.f32.mxu0 %vm7575_vm2, %v7574_v3  ;;  %6832 = vmatprep.mubr.msk.f32.mxu1 %vm7575_vm2, %v7574_v3  ;;  %vm7628_vm3 = vmpackc.low %vm42_vm1, %vm41_vm0  ;;  %v7642_v20 = vshrl.u32 %v57_v18, 7  ;;  %s6405_s29 = sld [smem:[#allocation6 + $0x4]]  ;;  %v7645_v22 = vand.u32 127, %v57_v18  ;;  %s6408_s30 = sld [smem:[#allocation6 + $0x7]] }
  0x25   :  { %v7497_v6 = vpack.i.bf16 %v6401_v5, %v6400_v4  ;;  %v7622_v7 = vsub.f32 %v6401_v5, %v6401_v5  ;;  %v7624_v8 = vsub.f32 %v6400_v4, %v6400_v4  ;;  %s47_s3 = sld [smem:[#allocation6]]  ;;  %s6404_s4 = sld [smem:[#allocation6 + $0x3]] }
  0x26   :  { %v61_v21 = vmul.u32 2, %v7642_v20  ;;  %s6407_s5 = sld [smem:[#allocation6 + $0x6]]  ;;  %s6403_s6 = sld [smem:[#allocation6 + $0x2]]  ;;  %vm1503_vm8 = vcmp.ge.s32.totalorder %v7645_v22, 1  ;;  %vm1504_vm9 = vcmp.lt.s32.totalorder %v7645_v22, 9  ;;  %vm1536_vm13 = vcmp.ge.s32.totalorder %v7645_v22, 11 }
  0x27   :  { %7498 = vrot.lane.b32.xlu0 %v7497_v6, %s7576_s0  ;;  %v650_v10 = vand.u32 4294901760, %v7622_v7  ;;  %v643_v11 = vand.u32 4294901760, %v7624_v8  ;;  %v7243_v17 = vpack.c.bf16 %v7622_v7, %v7624_v8  ;;  %s6406_s7 = sld [smem:[#allocation6 + $0x5]]  ;;  %s6409_s8 = sld [smem:[#allocation6 + $0x8]]  ;;  %vm7747_vm10 = vmand %vm1503_vm8, %vm1504_vm9  ;;  %vm1537_vm14 = vcmp.lt.s32.totalorder %v7645_v22, 19 }
  0x28   :  { %v62_v23 = vadd.s32 4294967295, %v61_v21  ;;  %vm66_vm5 = vcmp.eq.s32.totalorder %v7645_v22, %v61_v21  ;;  %v69_v24 = vadd.s32 1, %v61_v21  ;;  %s6410_s9 = sld [smem:[#allocation6 + $0x1b]]  ;;  %s6435_s10 = sld [smem:[#allocation6 + $0xa]] }
  0x29   :  { %v644_v12 = vsub.f32 %v7624_v8, %v643_v11  ;;  %v651_v13 = vsub.f32 %v7622_v7, %v650_v10  ;;  %v7640_v19 = vpack.c.bf16 %v650_v10, %v643_v11  ;;  %v7653_v26 = vsel %vm66_vm5, 1.0, %v7574_v3  ;;  %s6438_s11 = sld [smem:[#allocation6 + $0xd]]  ;;  %s6441_s12 = sld [smem:[#allocation6 + $0x10]] }
  0x2a   :  { %vm63_vm4 = vcmp.eq.s32.totalorder %v7645_v22, %v62_v23  ;;  %v81_v27 = vstv %s6402_s28  ;;  %v83_v28 = vstv %s6405_s29  ;;  %vm70_vm6 = vcmp.eq.s32.totalorder %v7645_v22, %v69_v24  ;;  %s6434_s13 = sld [smem:[#allocation6 + $0x9]]  ;;  %s6437_s14 = sld [smem:[#allocation6 + $0xc]] }
  0x2b   :  { %7503 = vrot.lane.b32.xlu0 %v7497_v6, %s7577_s27  ;;  %v645_v14 = vand.u32 4294901760, %v644_v12  ;;  %v652_v15 = vand.u32 4294901760, %v651_v13  ;;  %v7650_v25 = vsel %vm63_vm4, 1.0, %v7574_v3  ;;  %v84_v30 = vmul.f32 %v7653_v26, %v83_v28  ;;  %vm7774_vm4 = vmand %vm1536_vm13, %vm1537_vm14  ;;  %s6440_s15 = sld [smem:[#allocation6 + $0xf]]  ;;  %s6436_s16 = sld [smem:[#allocation6 + $0xb]] }
  0x2c   :  { %v82_v29 = vmul.f32 %v7650_v25, %v81_v27  ;;  %v7659_v31 = vsel %vm70_vm6, 1.0, %v7574_v3  ;;  %v86_v32 = vstv %s6408_s30  ;;  %v73_v58 = vstv %s47_s3  ;;  %s6439_s17 = sld [smem:[#allocation6 + $0xe]]  ;;  %s6442_s18 = sld [smem:[#allocation6 + $0x11]] }
  0x2d   :  { %v7636_v16 = vpack.c.bf16 %v652_v15, %v645_v14  ;;  %v87_v34 = vmul.f32 %v7659_v31, %v86_v32  ;;  %v75_v59 = vstv %s6404_s4  ;;  %v74_v60 = vmul.f32 %v7650_v25, %v73_v58  ;;  %s6443_s19 = sld [smem:[#allocation6 + $0x1c]]  ;;  %s6454_s20 = sld [smem:[#allocation6 + $0x13]] }
  0x2e   :  { %v85_v33 = vadd.f32 %v84_v30, %v82_v29  ;;  %v76_v61 = vmul.f32 %v7653_v26, %v75_v59  ;;  %v78_v62 = vstv %s6407_s5  ;;  %v7578_v13 = vmov 1.0|1.0   ;;  %s6457_s21 = sld [smem:[#allocation6 + $0x16]]  ;;  %s6460_s1 = sld [smem:[#allocation6 + $0x19]] }
  0x2f   :  { %v79_v0 = vmul.f32 %v7659_v31, %v78_v62  ;;  %v1022_v15 = vstv %s6403_s6  ;;  %v1027_v23 = vstv %s6409_s8  ;;  %v2099_v58 = vstv %s6438_s11  ;;  %s6453_s22 = sld [smem:[#allocation6 + $0x12]]  ;;  %s6456_s23 = sld [smem:[#allocation6 + $0x15]] }
  0x30   :  { %v88_v35 = vadd.f32 %v87_v34, %v85_v33  ;;  %v77_v63 = vadd.f32 %v76_v61, %v74_v60  ;;  %v1023_v18 = vmul.f32 %v7650_v25, %v1022_v15  ;;  %v1028_v8 = vmul.f32 %v7659_v31, %v1027_v23  ;;  %s6459_s24 = sld [smem:[#allocation6 + $0x18]]  ;;  %s6455_s25 = sld [smem:[#allocation6 + $0x14]] }
  0x31   :  { %s6458_s26 = sld [smem:[#allocation6 + $0x17]]  ;;  %s7579_s28 = smov [#allocation7]  }
  0x32   :  { %v99_v36 = vsel %vm97_vm7, %v88_v35, 0  ;;  %v80_v1 = vadd.f32 %v79_v0, %v77_v63  ;;  %s6390_s29 = sshll.u32 %s7579_s28, 4  ;;  %s6391_s29 = int_to_ptr.vmem [resolvable:$true] %s6390_s29 }
  0x33   :  { %v168_v37 = vand.u32 4294901760, %v99_v36  ;;  %s7541_s30 = scalar_lea.vmem %s6391_s29, 16  ;;  %s7545_s3 = scalar_lea.vmem %s6391_s29, 32 }
  0x34   :  { %v561_v5 = vsel %vm97_vm7, %v80_v1, 0  ;;  %v1502_v1 = vadd.s32 32, %v7642_v20  ;;  %p7542_p13 = scmp.ne.s32.totalorder %s6391_s29, %s7541_s30  ;;  %p7546_p0 = scmp.lt.s32.totalorder %s6391_s29, %s6391_s29 }
  0x35   :  { %v169_v38 = vsub.f32 %v99_v36, %v168_v37  ;;  %v630_v6 = vand.u32 4294901760, %v561_v5  ;;  %p7547_p1 = scmp.lt.s32.totalorder %s7545_s3, %s7541_s30 }
  0x37   :  { %v170_v39 = vand.u32 4294901760, %v169_v38  ;;  %v631_v10 = vsub.f32 %v561_v5, %v630_v6  ;;  %p7548_p2 = por %p7547_p1, %p7546_p0 }
  0x39   :  { %v171_v43 = vsub.f32 %v169_v38, %v170_v39  ;;  %v632_v11 = vand.u32 4294901760, %v631_v10  ;;  %p7549_p3 = pnand %p7548_p2, %p7542_p13 }
  0x3b   :  { %v172_v49 = vand.u32 4294901760, %v171_v43  ;;  %v633_v12 = vsub.f32 %v631_v10, %v632_v11 }
  0x3d   :  { %v634_v14 = vand.u32 4294901760, %v633_v12 }
  0x99   :  { %v7499_v40 = vpop.permute.xlu0 %7498 }
  0x9a   :  { %v7501_v41 = vunpack.i.h.bf16 %v7499_v40  ;;  %v7500_v42 = vunpack.i.l.bf16 %v7499_v40 }
  0x9c   :  { %v105_v44 = vand.u32 4294901760, %v7501_v41  ;;  %v102_v45 = vand.u32 4294901760, %v7500_v42 }
  0x9e   :  { %v187_v46 = vsub.f32 %v7501_v41, %v105_v44  ;;  %v180_v47 = vsub.f32 %v7500_v42, %v102_v45  ;;  %v7219_v48 = vpack.c.bf16 %v105_v44, %v102_v45 }
  0xa0   :  { %v188_v50 = vand.u32 4294901760, %v187_v46  ;;  %v181_v51 = vand.u32 4294901760, %v180_v47  ;;  %7220 = vmatpush3.bf16.msra.mxu0 %v7219_v48  ;;  %v7225_v57 = vpack.c.bf16 %v187_v46, %v180_v47 }
  0xa1   :  { %7221 = vmatprep.subr.bf16.mxu0 %v7573_v2 }
  0xa2   :  { %v189_v52 = vsub.f32 %v187_v46, %v188_v50  ;;  %v182_v53 = vsub.f32 %v180_v47, %v181_v51  ;;  %v7231_v4 = vpack.c.bf16 %v188_v50, %v181_v51  ;;  %v7739_v51 = vadd.s32 8, %v7642_v20 }
  0xa3   :  { %6701 = vmatmul.mubr.f32.vlgmr.msra.gmra.mrb[0].mxu0 %v172_v49  ;;  %v6420_v49 = vadd.s32 4294967295, %v7645_v22 }
  0xa4   :  { %v190_v54 = vand.u32 4294901760, %v189_v52  ;;  %v183_v55 = vand.u32 4294901760, %v182_v53  ;;  %6707 = vmatprep.mubr.msk.f32.mxu0 %vm7575_vm2, %v7574_v3 }
  0xa5   :  { %v7741_v52 = vmul.u32 2, %v6420_v49 }
  0xa6   :  { %v7222_v56 = vpack.c.bf16 %v190_v54, %v183_v55  ;;  %v7770_v55 = vadd.s32 16, %v7642_v20  ;;  %v2097_v54 = vstv %s6435_s10 }
  0xa7   :  { %vm1508_vm11 = vcmp.eq.s32.totalorder %v7642_v20, %v7741_v52  ;;  %vm1509_vm12 = vcmp.eq.s32.totalorder %v7739_v51, %v7741_v52 }
  0xa8   :  { %7223 = vmatpush3.bf16.msra.mxu0 %v7222_v56  ;;  %vm1513_vm15 = vmand %vm7747_vm10, %vm1508_vm11  ;;  %v1501_v56 = vadd.s32 24, %v7642_v20  ;;  %vm1510_vm6 = vcmp.eq.s32.totalorder %v7770_v55, %v7741_v52 }
  0xa9   :  { %7224 = vmatprep.subr.bf16.mxu0 %v7573_v2  ;;  %vm1514_vm1 = vmand %vm7747_vm10, %vm1509_vm12 }
  0xaa   :  { %v6422_v59 = vsel %vm1514_vm1, 1.0, %v7574_v3  ;;  %vm1515_vm14 = vmand %vm7747_vm10, %vm1510_vm6 }
  0xab   :  { %6708 = vmatmul.mubr.f32.vlgmr.msra.gmra.mrb[0].mxu0 %v168_v37  ;;  %v6423_v0 = vsel %vm1515_vm14, 1.0, %v7574_v3  ;;  %vm1576_vm14 = vcmask 1041408  }
  0xac   :  { %7226 = vmatpush3.bf16.msra.mxu0 %v7225_v57  ;;  %6714 = vmatprep.mubr.msk.f32.mxu0 %vm7575_vm2, %v7574_v3  ;;  %v6421_v57 = vsel %vm1513_vm15, 1.0, %v7574_v3 }
  0xad   :  { %7227 = vmatprep.subr.bf16.mxu0 %v7573_v2 }
  0xb3   :  { %6715 = vmatmul.mubr.f32.vlgmr.msra.gmra.mrb[0].mxu0 %v169_v38 }
  0xb4   :  { %7229 = vmatpush3.bf16.msra.mxu0 %v7219_v48  ;;  %6721 = vmatprep.mubr.msk.f32.mxu0 %vm7575_vm2, %v7574_v3 }
  0xb5   :  { %7230 = vmatprep.subr.bf16.mxu0 %v7573_v2 }
  0xbb   :  { %6722 = vmatmul.mubr.f32.vlgmr.msra.gmra.mrb[0].mxu0 %v170_v39 }
  0xbc   :  { %7232 = vmatpush3.bf16.msra.mxu0 %v7231_v4  ;;  %6728 = vmatprep.mubr.msk.f32.mxu0 %vm7575_vm2, %v7574_v3 }
  0xbd   :  { %7233 = vmatprep.subr.bf16.mxu0 %v7573_v2 }
  0xc3   :  { %6729 = vmatmul.mubr.f32.vlgmr.msra.gmra.mrb[0].mxu0 %v168_v37 }
  0xc4   :  { %7235 = vmatpush3.bf16.msra.mxu0 %v7219_v48  ;;  %6735 = vmatprep.mubr.msk.f32.mxu0 %vm7575_vm2, %v7574_v3  ;;  %v6427_v48 = vadd.s32 4294967285, %v7645_v22 }
  0xc5   :  { %7236 = vmatprep.subr.bf16.mxu0 %v7573_v2 }
  0xc6   :  { %v1540_v50 = vmul.u32 2, %v6427_v48 }
  0xc8   :  { %v1541_v53 = vadd.s32 18, %v1540_v50 }
  0xca   :  { %vm1542_vm0 = vcmp.eq.s32.totalorder %v7642_v20, %v1541_v53  ;;  %vm1544_vm13 = vcmp.eq.s32.totalorder %v7770_v55, %v1541_v53  ;;  %vm1545_vm15 = vcmp.eq.s32.totalorder %v1501_v56, %v1541_v53 }
  0xcb   :  { %6736 = vmatmul.mubr.f32.vlgmr.msra.gmra.mrb[0].mxu0 %v168_v37  ;;  %vm1547_vm5 = vmand %vm7774_vm4, %vm1542_vm0 }
  0xcc   :  { %7238 = vmatpush3.bf16.msk.msra.mxu0 %vm7628_vm3, %v7578_v13  ;;  %6742 = vmatprep.mubr.msk.f32.mxu0 %vm7575_vm2, %v7574_v3  ;;  %v6428_v60 = vsel %vm1547_vm5, 1.0, %v7574_v3  ;;  %vm1549_vm1 = vmand %vm7774_vm4, %vm1544_vm13  ;;  %vm1512_vm5 = vcmp.eq.s32.totalorder %v1502_v1, %v7741_v52 }
  0xcd   :  { %7239 = vmatprep.subr.bf16.mxu0 %v7573_v2  ;;  %v1562_v62 = vadd.f32 %v6428_v60, %v6421_v57 }
  0xcf   :  { %v1581_v4 = vand.u32 4294901760, %v1562_v62 }
  0xd3   :  { %6743 = vmatmul.mubr.f32.vlgmr.msra.gmra.mrb[0].mxu0 %v634_v14 }
  0xd4   :  { %7241 = vmatpush3.bf16.msra.mxu0 %v7636_v16  ;;  %6749 = vmatprep.mubr.msk.f32.mxu0 %vm7575_vm2, %v7574_v3  ;;  %v1024_v16 = vstv %s6406_s7 }
  0xd5   :  { %7242 = vmatprep.subr.bf16.mxu0 %v7573_v2  ;;  %v1025_v21 = vmul.f32 %v7653_v26, %v1024_v16 }
  0xd7   :  { %v1026_v7 = vadd.f32 %v1025_v21, %v1023_v18 }
  0xd9   :  { %v1029_v28 = vadd.f32 %v1028_v8, %v1026_v7 }
  0xdb   :  { %6750 = vmatmul.mubr.f32.vlgmr.msra.gmra.mrb[0].mxu0 %v630_v6  ;;  %v1037_v32 = vsel %vm97_vm7, %v1029_v28, 0  ;;  %vm1511_vm7 = vcmp.eq.s32.totalorder %v1501_v56, %v7741_v52 }
  0xdc   :  { %7244 = vmatpush3.bf16.msra.mxu0 %v7243_v17  ;;  %6756 = vmatprep.mubr.msk.f32.mxu0 %vm7575_vm2, %v7574_v3  ;;  %v7504_v17 = vpop.permute.xlu0 %7503  ;;  %v1106_v33 = vand.u32 4294901760, %v1037_v32  ;;  %vm1516_vm0 = vmand %vm7747_vm10, %vm1511_vm7 }
  0xdd   :  { %7245 = vmatprep.subr.bf16.mxu0 %v7573_v2  ;;  %v7506_v24 = vunpack.i.h.bf16 %v7504_v17  ;;  %v7505_v27 = vunpack.i.l.bf16 %v7504_v17  ;;  %v6424_v5 = vsel %vm1516_vm0, 1.0, %v7574_v3  ;;  %vm1517_vm7 = vmand %vm7747_vm10, %vm1512_vm5  ;;  %vm3486_vm5 = vcmp.ge.s32.totalorder %v7645_v22, 7 }
  0xde   :  { %v1107_v36 = vsub.f32 %v1037_v32, %v1106_v33  ;;  %v6425_v18 = vsel %vm1517_vm7, 1.0, %v7574_v3 }
  0xdf   :  { %v1043_v29 = vand.u32 4294901760, %v7506_v24  ;;  %v1040_v30 = vand.u32 4294901760, %v7505_v27 }
  0xe1   :  { %v1125_v34 = vsub.f32 %v7506_v24, %v1043_v29  ;;  %v1118_v35 = vsub.f32 %v7505_v27, %v1040_v30  ;;  %v7255_v40 = vpack.c.bf16 %v1043_v29, %v1040_v30 }
  0xe3   :  { %6757 = vmatmul.mubr.f32.vlgmr.msra.gmra.mrb[0].mxu0 %v631_v10  ;;  %v1126_v37 = vand.u32 4294901760, %v1125_v34  ;;  %v1119_v38 = vand.u32 4294901760, %v1118_v35  ;;  %v7261_v46 = vpack.c.bf16 %v1125_v34, %v1118_v35  ;;  %v6430_v10 = vsel %vm1549_vm1, 1.0, %v7574_v3 }
  0xe4   :  { %7247 = vmatpush3.bf16.msk.msra.mxu0 %vm7628_vm3, %v7578_v13  ;;  %6763 = vmatprep.mubr.msk.f32.mxu0 %vm7575_vm2, %v7574_v3 }
  0xe5   :  { %7248 = vmatprep.subr.bf16.mxu0 %v7573_v2  ;;  %v1127_v39 = vsub.f32 %v1125_v34, %v1126_v37  ;;  %v1120_v41 = vsub.f32 %v1118_v35, %v1119_v38  ;;  %v7267_v47 = vpack.c.bf16 %v1126_v37, %v1119_v38 }
  0xe7   :  { %v1128_v43 = vand.u32 4294901760, %v1127_v39  ;;  %v1121_v44 = vand.u32 4294901760, %v1120_v41 }
  0xe9   :  { %v7258_v45 = vpack.c.bf16 %v1128_v43, %v1121_v44 }
  0xeb   :  { %6764 = vmatmul.mubr.f32.vlgmr.msra.gmra.mrb[0].mxu0 %v632_v11  ;;  %v7805_v11 = vsub.f32 %v1562_v62, %v1581_v4 }
  0xec   :  { %7250 = vmatpush3.bf16.msra.mxu0 %v7640_v19  ;;  %6770 = vmatprep.mubr.msk.f32.mxu0 %vm7575_vm2, %v7574_v3  ;;  %v1108_v19 = vand.u32 4294901760, %v1107_v36 }
  0xed   :  { %7251 = vmatprep.subr.bf16.mxu0 %v7573_v2  ;;  %v1663_v17 = vand.u32 4294901760, %v7805_v11 }
  0xee   :  { %v1109_v42 = vsub.f32 %v1107_v36, %v1108_v19 }
  0xef   :  { %v1664_v32 = vsub.f32 %v7805_v11, %v1663_v17 }
  0xf0   :  { %v1110_v9 = vand.u32 4294901760, %v1109_v42 }
  0xf3   :  { %6771 = vmatmul.mubr.f32.vlgmr.msra.gmra.mrb[0].mxu0 %v630_v6 }
  0xf4   :  { %7253 = vmatpush3.bf16.msk.msra.mxu0 %vm7628_vm3, %v7578_v13  ;;  %6777 = vmatprep.mubr.msk.f32.mxu0 %vm7575_vm2, %v7574_v3  ;;  %vm1543_vm3 = vcmp.eq.s32.totalorder %v7739_v51, %v1541_v53  ;;  %v1564_v13 = vadd.f32 %v6430_v10, %v6423_v0  ;;  %v6426_v0 = vsel %vm7747_vm10, 1.0, %v7574_v3  ;;  %vm2109_vm10 = vcmask 64512  }
  0xf5   :  { %7254 = vmatprep.subr.bf16.mxu0 %v7573_v2  ;;  %vm1548_vm9 = vmand %vm7774_vm4, %vm1543_vm3 }
  0xf6   :  { %v6429_v61 = vsel %vm1548_vm9, 1.0, %v7574_v3  ;;  %vm1550_vm3 = vmand %vm7774_vm4, %vm1545_vm15  ;;  %vm1546_vm9 = vcmp.eq.s32.totalorder %v1502_v1, %v1541_v53  ;;  %v1587_v21 = vand.u32 4294901760, %v1564_v13  ;;  %vm1572_vm15 = vcmask 277504  }
  0xf7   :  { %v1563_v63 = vadd.f32 %v6429_v61, %v6422_v59  ;;  %v6431_v12 = vsel %vm1550_vm3, 1.0, %v7574_v3  ;;  %vm1551_vm13 = vmand %vm7774_vm4, %vm1546_vm9  ;;  %v6433_v1 = vsel %vm7774_vm4, 1.0, %v7574_v3  ;;  %vm3469_vm4 = vcmp.lt.s32.totalorder %v7645_v22, 5 }
  0xf8   :  { %v1565_v16 = vadd.f32 %v6431_v12, %v6424_v5  ;;  %v6432_v23 = vsel %vm1551_vm13, 1.0, %v7574_v3  ;;  %v1676_v27 = vsub.f32 %v1564_v13, %v1587_v21  ;;  %v1570_v5 = vstv %s6410_s9  ;;  %vm7948_vm0 = vmand %vm1503_vm8, %vm3469_vm4 }
  0xf9   :  { %v1566_v8 = vadd.f32 %v6432_v23, %v6425_v18  ;;  %vm3471_vm1 = vmand %vm7948_vm0, %vm1508_vm11  ;;  %vm3487_vm8 = vcmp.lt.s32.totalorder %v7645_v22, 11 }
  0xfa   :  { %v1590_v7 = vand.u32 4294901760, %v1565_v16  ;;  %v1677_v34 = vand.u32 4294901760, %v1676_v27  ;;  %vm3472_vm3 = vmand %vm7948_vm0, %vm1509_vm12 }
  0xfb   :  { %6778 = vmatmul.mubr.f32.vlgmr.msra.gmra.mrb[0].mxu0 %v630_v6  ;;  %v1584_v6 = vand.u32 4294901760, %v1563_v63  ;;  %v1578_v30 = vsel %vm1576_vm14, %v1566_v8, 0  ;;  %vm7964_vm9 = vmand %vm3486_vm5, %vm3487_vm8  ;;  %vm5418_vm5 = vcmp.lt.s32.totalorder %v7645_v22, 4 }
  0xfc   :  { %7256 = vmatpush3.bf16.msra.mxu0 %v7255_v40  ;;  %6784 = vmatprep.mubr.msk.f32.mxu0 %vm7575_vm2, %v7574_v3  ;;  %v7819_v28 = vpack.c.bf16 %v1590_v7, %v1587_v21  ;;  %v1683_v29 = vsub.f32 %v1565_v16, %v1590_v7  ;;  %v7824_v35 = vand.u32 4294901760, %v1578_v30  ;;  %v2102_v16 = vstv %s6441_s12 }
  0xfd   :  { %7257 = vmatprep.subr.bf16.mxu0 %v7573_v2  ;;  %v7810_v14 = vpack.c.bf16 %v1584_v6, %v1581_v4  ;;  %v1669_v15 = vsub.f32 %v1563_v63, %v1584_v6  ;;  %v1569_v4 = vadd.f32 %v6433_v1, %v6426_v0  ;;  %v2103_v21 = vmul.f32 %v7659_v31, %v2102_v16 }
  0xfe   :  { %v1684_v37 = vand.u32 4294901760, %v1683_v29  ;;  %v1690_v56 = vsub.f32 %v1578_v30, %v7824_v35 }
  0xff   :  { %7274 = vmatpush3.bf16.msra.mxu1 %v7810_v14  ;;  %v1670_v24 = vand.u32 4294901760, %v1669_v15  ;;  %v7285_v44 = vpack.c.bf16 %v1669_v15, %v7805_v11  ;;  %v1571_v6 = vmul.f32 %v1570_v5, %v1569_v4 }
 0x100   :  { %7275 = vmatprep.subr.bf16.mxu1 %v7573_v2  ;;  %v1685_v39 = vsub.f32 %v1683_v29, %v1684_v37  ;;  %v1691_v60 = vand.u32 4294901760, %v1690_v56 }
 0x102   :  { %v1686_v42 = vand.u32 4294901760, %v1685_v39  ;;  %v1692_v62 = vsub.f32 %v1690_v56, %v1691_v60  ;;  %v2094_v39 = vstv %s6440_s15 }
 0x103   :  { %6785 = vmatmul.mubr.f32.vlgmr.msra.gmra.mrb[0].mxu0 %v1110_v9  ;;  %7277 = vmatpush3.bf16.msra.mxu1 %v7819_v28  ;;  %v7288_v9 = vpack.c.bf16 %v1683_v29, %v1676_v27 }
 0x104   :  { %7259 = vmatpush3.bf16.msra.mxu0 %v7258_v45  ;;  %6791 = vmatprep.mubr.msk.f32.mxu0 %vm7575_vm2, %v7574_v3  ;;  %v7297_v45 = vpack.c.bf16 %v1670_v24, %v1663_v17  ;;  %v1693_v63 = vand.u32 4294901760, %v1692_v62  ;;  %v3013_v62 = vstv %s6442_s18 }
 0x105   :  { %7260 = vmatprep.subr.bf16.mxu0 %v7573_v2  ;;  %6830 = vmatprep.subr.mxu1 %v7574_v3  ;;  %v3014_v0 = vmul.f32 %v7659_v31, %v3013_v62 }
 0x107   :  { %6831 = vmatpush3.msra.mxu1 %v7824_v35 }
 0x108   :  { %7278 = vmatprep.subr.bf16.mxu1 %v7573_v2 }
 0x10b   :  { %6792 = vmatmul.mubr.f32.vlgmr.msra.gmra.mrb[0].mxu0 %v1106_v33 }
 0x10c   :  { %7262 = vmatpush3.bf16.msra.mxu0 %v7261_v46  ;;  %6798 = vmatprep.mubr.msk.f32.mxu0 %vm7575_vm2, %v7574_v3  ;;  %v7300_v46 = vpack.c.bf16 %v1684_v37, %v1677_v34  ;;  %v2091_v37 = vstv %s6437_s14 }
 0x10d   :  { %7263 = vmatprep.subr.bf16.mxu0 %v7573_v2 }
 0x113   :  { %6799 = vmatmul.mubr.f32.vlgmr.msra.gmra.mrb[0].mxu0 %v1107_v36  ;;  %v1665_v36 = vand.u32 4294901760, %v1664_v32 }
 0x114   :  { %7265 = vmatpush3.bf16.msra.mxu0 %v7255_v40  ;;  %6805 = vmatprep.mubr.msk.f32.mxu0 %vm7575_vm2, %v7574_v3 }
 0x115   :  { %7266 = vmatprep.subr.bf16.mxu0 %v7573_v2 }
 0x11b   :  { %6806 = vmatmul.mubr.f32.vlgmr.msra.gmra.mrb[0].mxu0 %v1108_v19  ;;  %v1678_v19 = vsub.f32 %v1676_v27, %v1677_v34 }
 0x11c   :  { %7268 = vmatpush3.bf16.msra.mxu0 %v7267_v47  ;;  %6812 = vmatprep.mubr.msk.f32.mxu0 %vm7575_vm2, %v7574_v3 }
 0x11d   :  { %7269 = vmatprep.subr.bf16.mxu0 %v7573_v2  ;;  %v1679_v41 = vand.u32 4294901760, %v1678_v19  ;;  %v2092_v19 = vmul.f32 %v7653_v26, %v2091_v37 }
 0x11f   :  { %v7282_v43 = vpack.c.bf16 %v1686_v42, %v1679_v41  ;;  %v2095_v41 = vmul.f32 %v7659_v31, %v2094_v39 }
 0x123   :  { %6813 = vmatmul.mubr.f32.vlgmr.msra.gmra.mrb[0].mxu0 %v1106_v33 }
 0x124   :  { %7271 = vmatpush3.bf16.msra.mxu0 %v7255_v40  ;;  %6819 = vmatprep.mubr.msk.f32.mxu0 %vm7575_vm2, %v7574_v3 }
 0x125   :  { %7308 = vmatprep.subr.bf16.mxu0 %v7573_v2 }
 0x12b   :  { %6820 = vmatmul.mubr.f32.vlgmr.msra.gmra.mrb[0].mxu0 %v1106_v33  ;;  %v1671_v33 = vsub.f32 %v1669_v15, %v1670_v24  ;;  %v2100_v15 = vmul.f32 %v7653_v26, %v2099_v58 }
 0x12c   :  { %6996 = vmatprep.mubr.msk.f32.mxu0 %vm7575_vm2, %v7574_v3 }
 0x12d   :  { %v1672_v38 = vand.u32 4294901760, %v1671_v33 }
 0x12f   :  { %v7279_v40 = vpack.c.bf16 %v1672_v38, %v1665_v36  ;;  %v2089_v36 = vstv %s6434_s13 }
 0x130   :  { %v2090_v38 = vmul.f32 %v7650_v25, %v2089_v36 }
 0x1fe   :  { %v1494_v47 = vpop.f32.mrb[0].mxu0 }
 0x1ff   :  { %v1574_v48 = vsel %vm1572_vm15, %v1494_v47, 0  ;;  %v6821_v49 = vpop.f32.mrb[1].mxu0  ;;  %vm3473_vm15 = vmand %vm7948_vm0, %vm1510_vm6  ;;  %vm3512_vm6 = vcmask 146432  }
 0x200   :  { %v1650_v50 = vand.u32 4294901760, %v1574_v48 }
 0x202   :  { %v1651_v53 = vsub.f32 %v1574_v48, %v1650_v50 }
 0x204   :  { %v1652_v57 = vand.u32 4294901760, %v1651_v53 }
 0x206   :  { %v1653_v59 = vsub.f32 %v1651_v53, %v1652_v57 }
 0x208   :  { %v1654_v61 = vand.u32 4294901760, %v1653_v59  ;;  %v3010_v59 = vstv %s6439_s17 }
 0x20a   :  { %6833 = vmatmul.mubr.f32.vlgmr.msra.gmra.mrb[0].mxu1 %v1654_v61  ;;  %v3011_v61 = vmul.f32 %v7653_v26, %v3010_v59 }
 0x20b   :  { %7280 = vmatpush3.bf16.msra.mxu1 %v7279_v40  ;;  %6845 = vmatprep.mubr.msk.f32.mxu1 %vm7575_vm2, %v7574_v3  ;;  %v2093_v40 = vadd.f32 %v2092_v19, %v2090_v38 }
 0x20c   :  { %7281 = vmatprep.subr.bf16.mxu1 %v7573_v2 }
 0x20d   :  { %v2096_v42 = vadd.f32 %v2095_v41, %v2093_v40 }
 0x20f   :  { %7283 = vmatpush3.bf16.msra.mxu1 %v7282_v43  ;;  %v2560_v43 = vsel %vm2109_vm10, %v2096_v42, 0 }
 0x210   :  { %6843 = vmatprep.subr.mxu1 %v7574_v3 }
 0x213   :  { %6844 = vmatpush3.msra.mxu1 %v1693_v63 }
 0x214   :  { %6846 = vmatmul.mubr.f32.vlgmr.msra.gmra.mrb[0].mxu1 %v1650_v50  ;;  %7284 = vmatprep.subr.bf16.mxu1 %v7573_v2 }
 0x215   :  { %7286 = vmatpush3.bf16.msra.mxu1 %v7285_v44  ;;  %6858 = vmatprep.mubr.msk.f32.mxu1 %vm7575_vm2, %v7574_v3  ;;  %v2628_v44 = vand.u32 4294901760, %v2560_v43 }
 0x216   :  { %7287 = vmatprep.subr.bf16.mxu1 %v7573_v2 }
 0x219   :  { %7289 = vmatpush3.bf16.msra.mxu1 %v7288_v9 }
 0x21a   :  { %6856 = vmatprep.subr.mxu1 %v7574_v3 }
 0x21d   :  { %6857 = vmatpush3.msra.mxu1 %v1690_v56 }
 0x21e   :  { %6859 = vmatmul.mubr.f32.vlgmr.msra.gmra.mrb[0].mxu1 %v1651_v53  ;;  %7290 = vmatprep.subr.bf16.mxu1 %v7573_v2 }
 0x21f   :  { %7292 = vmatpush3.bf16.msra.mxu1 %v7810_v14  ;;  %6871 = vmatprep.mubr.msk.f32.mxu1 %vm7575_vm2, %v7574_v3 }
 0x220   :  { %7293 = vmatprep.subr.bf16.mxu1 %v7573_v2 }
 0x223   :  { %7295 = vmatpush3.bf16.msra.mxu1 %v7819_v28 }
 0x224   :  { %6869 = vmatprep.subr.mxu1 %v7574_v3 }
 0x227   :  { %6870 = vmatpush3.msra.mxu1 %v7824_v35 }
 0x228   :  { %6872 = vmatmul.mubr.f32.vlgmr.msra.gmra.mrb[0].mxu1 %v1652_v57  ;;  %7296 = vmatprep.subr.bf16.mxu1 %v7573_v2  ;;  %v3008_v57 = vstv %s6436_s16 }
 0x229   :  { %7298 = vmatpush3.bf16.msra.mxu1 %v7297_v45  ;;  %6884 = vmatprep.mubr.msk.f32.mxu1 %vm7575_vm2, %v7574_v3  ;;  %v2629_v45 = vsub.f32 %v2560_v43, %v2628_v44 }
 0x22a   :  { %7299 = vmatprep.subr.bf16.mxu1 %v7573_v2 }
 0x22b   :  { %v2630_v47 = vand.u32 4294901760, %v2629_v45 }
 0x22d   :  { %7301 = vmatpush3.bf16.msra.mxu1 %v7300_v46  ;;  %v2631_v49 = vsub.f32 %v2629_v45, %v2630_v47 }
 0x22e   :  { %6882 = vmatprep.subr.mxu1 %v7574_v3 }
 0x22f   :  { %v2632_v53 = vand.u32 4294901760, %v2631_v49 }
 0x231   :  { %6883 = vmatpush3.msra.mxu1 %v1691_v60  ;;  %v3009_v60 = vmul.f32 %v7650_v25, %v3008_v57 }
 0x232   :  { %6885 = vmatmul.mubr.f32.vlgmr.msra.gmra.mrb[0].mxu1 %v1650_v50  ;;  %7302 = vmatprep.subr.bf16.mxu1 %v7573_v2 }
 0x233   :  { %7304 = vmatpush3.bf16.msra.mxu1 %v7810_v14  ;;  %6897 = vmatprep.mubr.msk.f32.mxu1 %vm7575_vm2, %v7574_v3  ;;  %v2098_v14 = vmul.f32 %v7650_v25, %v2097_v54  ;;  %v3012_v63 = vadd.f32 %v3011_v61, %v3009_v60 }
 0x234   :  { %7305 = vmatprep.subr.bf16.mxu1 %v7573_v2 }
 0x235   :  { %v2101_v18 = vadd.f32 %v2100_v15, %v2098_v14  ;;  %v3015_v1 = vadd.f32 %v3014_v0, %v3012_v63  ;;  %v6447_v0 = vsel %vm7948_vm0, 1.0, %v7574_v3  ;;  %vm4021_vm0 = vcmask 31744  }
 0x237   :  { %7307 = vmatpush3.bf16.msra.mxu1 %v7819_v28  ;;  %v2104_v23 = vadd.f32 %v2103_v21, %v2101_v18  ;;  %v3020_v4 = vsel %vm2109_vm10, %v3015_v1, 0  ;;  %v6448_v18 = vadd.s32 4294967289, %v7645_v22  ;;  %v6452_v1 = vsel %vm7964_vm9, 1.0, %v7574_v3 }
 0x238   :  { %6895 = vmatprep.subr.mxu1 %v7574_v3 }
 0x239   :  { %v2111_v7 = vsel %vm2109_vm10, %v2104_v23, 0  ;;  %v3490_v23 = vmul.u32 2, %v6448_v18 }
 0x23a   :  { %v2179_v8 = vand.u32 4294901760, %v2111_v7 }
 0x23b   :  { %6896 = vmatpush3.msra.mxu1 %v7824_v35 }
 0x23c   :  { %6898 = vmatmul.mubr.f32.vlgmr.msra.gmra.mrb[0].mxu1 %v1650_v50  ;;  %6900 = vmatprep.subr.mxu1 %v7574_v3  ;;  %v2180_v17 = vsub.f32 %v2111_v7, %v2179_v8  ;;  %v3491_v7 = vadd.s32 10, %v3490_v23 }
 0x23d   :  { %6902 = vmatprep.mubr.msk.f32.mxu1 %vm7575_vm2, %v7574_v3 }
 0x23e   :  { %v2181_v24 = vand.u32 4294901760, %v2180_v17  ;;  %vm3492_vm7 = vcmp.eq.s32.totalorder %v7642_v20, %v3491_v7  ;;  %vm3493_vm13 = vcmp.eq.s32.totalorder %v7739_v51, %v3491_v7  ;;  %vm3494_vm10 = vcmp.eq.s32.totalorder %v7770_v55, %v3491_v7 }
 0x23f   :  { %vm3495_vm11 = vmand %vm7964_vm9, %vm3492_vm7  ;;  %vm5432_vm7 = vcmp.ge.s32.totalorder %v7645_v22, 6 }
 0x240   :  { %v2182_v27 = vsub.f32 %v2180_v17, %v2181_v24  ;;  %vm3496_vm12 = vmand %vm7964_vm9, %vm3493_vm13  ;;  %vm5433_vm13 = vcmp.lt.s32.totalorder %v7645_v22, 8 }
 0x241   :  { %vm3497_vm4 = vmand %vm7964_vm9, %vm3494_vm10 }
 0x242   :  { %v2183_v29 = vand.u32 4294901760, %v2182_v27  ;;  %v6449_v27 = vsel %vm3495_vm11, 1.0, %v7574_v3  ;;  %v6451_v36 = vsel %vm3497_vm4, 1.0, %v7574_v3 }
 0x30f   :  { %v2074_v10 = vpop.f32.mrb[0].mxu1 }
 0x310   :  { %v7362_v11 = vadd.f32 %v2074_v10, %v1571_v6  ;;  %v6899_v12 = vpop.f32.mrb[1].mxu1  ;;  %v3088_v6 = vand.u32 4294901760, %v3020_v4 }
 0x312   :  { %v7870_v13 = vmax.f32 %v7362_v11, 0.0  ;;  %v3089_v11 = vsub.f32 %v3020_v4, %v3088_v6  ;;  %v3509_v4 = vadd.f32 %v6452_v1, %v6447_v0 }
 0x314   :  { %2106 = vrot.lane.b32.xlu1 %v7870_v13, %s7576_s0  ;;  %v2563_v9 = vand.u32 4294901760, %v7870_v13 }
 0x316   :  { %v2640_v46 = vsub.f32 %v7870_v13, %v2563_v9 }
 0x318   :  { %3016 = vrot.lane.b32.xlu1 %v7870_v13, %s7577_s27  ;;  %v2641_v48 = vand.u32 4294901760, %v2640_v46  ;;  %v3090_v13 = vand.u32 4294901760, %v3089_v11 }
 0x31a   :  { %v2642_v50 = vsub.f32 %v2640_v46, %v2641_v48  ;;  %v3091_v58 = vsub.f32 %v3089_v11, %v3090_v13 }
 0x31c   :  { %v2643_v56 = vand.u32 4294901760, %v2642_v50  ;;  %v3092_v15 = vand.u32 4294901760, %v3091_v58  ;;  %v4012_v58 = vstv %s6457_s21 }
 0x386   :  { %v2107_v28 = vpop.permute.xlu1 %2106 }
 0x387   :  { %v2114_v30 = vand.u32 4294901760, %v2107_v28 }
 0x389   :  { %v2191_v32 = vsub.f32 %v2107_v28, %v2114_v30  ;;  %6901 = vmatpush3.msra.mxu1 %v2114_v30  ;;  %v6450_v28 = vsel %vm3496_vm12, 1.0, %v7574_v3 }
 0x38a   :  { %6903 = vmatmul.mubr.f32.vlgmr.msra.gmra.mrb[2].mxu1 %v2183_v29  ;;  %6905 = vmatprep.subr.mxu1 %v7574_v3  ;;  %v3017_v5 = vpop.permute.xlu1 %3016 }
 0x38b   :  { %v2192_v33 = vand.u32 4294901760, %v2191_v32  ;;  %6907 = vmatprep.mubr.msk.f32.mxu1 %vm7575_vm2, %v7574_v3  ;;  %v3023_v10 = vand.u32 4294901760, %v3017_v5 }
 0x38d   :  { %v2193_v34 = vsub.f32 %v2191_v32, %v2192_v33  ;;  %v3100_v12 = vsub.f32 %v3017_v5, %v3023_v10  ;;  %v3510_v5 = vstv %s6443_s19 }
 0x38f   :  { %v2194_v35 = vand.u32 4294901760, %v2193_v34  ;;  %v3101_v54 = vand.u32 4294901760, %v3100_v12 }
 0x391   :  { %6906 = vmatpush3.msra.mxu1 %v2194_v35  ;;  %v3102_v14 = vsub.f32 %v3100_v12, %v3101_v54  ;;  %v6446_v35 = vsel %vm3473_vm15, 1.0, %v7574_v3 }
 0x392   :  { %6908 = vmatmul.mubr.f32.vlgmr.msra.gmra.mrb[2].mxu1 %v2179_v8  ;;  %6910 = vmatprep.subr.mxu1 %v7574_v3  ;;  %v3506_v19 = vadd.f32 %v6451_v36, %v6446_v35 }
 0x393   :  { %6911 = vmatpush3.msra.mxu1 %v2191_v32  ;;  %6912 = vmatprep.mubr.msk.f32.mxu1 %vm7575_vm2, %v7574_v3  ;;  %v3103_v16 = vand.u32 4294901760, %v3102_v14 }
 0x394   :  { %6915 = vmatprep.subr.mxu1 %v7574_v3  ;;  %v3517_v39 = vsel %vm1576_vm14, %v3506_v19, 0 }
 0x395   :  { %v3526_v55 = vand.u32 4294901760, %v3517_v39 }
 0x397   :  { %v3613_v50 = vsub.f32 %v3517_v39, %v3526_v55  ;;  %v4007_v39 = vstv %s6459_s24 }
 0x399   :  { %v3614_v57 = vand.u32 4294901760, %v3613_v50 }
 0x39a   :  { %6913 = vmatmul.mubr.f32.vlgmr.msra.gmra.mrb[2].mxu1 %v2180_v17  ;;  %v6444_v17 = vsel %vm3471_vm1, 1.0, %v7574_v3  ;;  %vm4025_vm1 = vcmask 1043456  }
 0x39b   :  { %6916 = vmatpush3.msra.mxu1 %v2114_v30  ;;  %6917 = vmatprep.mubr.msk.f32.mxu1 %vm7575_vm2, %v7574_v3  ;;  %v3504_v29 = vadd.f32 %v6449_v27, %v6444_v17  ;;  %v3615_v61 = vsub.f32 %v3613_v50, %v3614_v57 }
 0x39c   :  { %6920 = vmatprep.subr.mxu1 %v7574_v3 }
 0x39d   :  { %v3520_v32 = vand.u32 4294901760, %v3504_v29  ;;  %v3616_v63 = vand.u32 4294901760, %v3615_v61 }
 0x39f   :  { %v3599_v34 = vsub.f32 %v3504_v29, %v3520_v32 }
 0x3a1   :  { %v3600_v52 = vand.u32 4294901760, %v3599_v34 }
 0x3a2   :  { %6918 = vmatmul.mubr.f32.vlgmr.msra.gmra.mrb[2].mxu1 %v2181_v24  ;;  %v6445_v24 = vsel %vm3472_vm3, 1.0, %v7574_v3  ;;  %vm5417_vm3 = vcmp.ge.s32.totalorder %v7645_v22, 2 }
 0x3a3   :  { %6921 = vmatpush3.msra.mxu1 %v2192_v33  ;;  %6922 = vmatprep.mubr.msk.f32.mxu1 %vm7575_vm2, %v7574_v3  ;;  %v3601_v41 = vsub.f32 %v3599_v34, %v3600_v52  ;;  %vm5419_vm8 = vmand %vm5417_vm3, %vm5418_vm5  ;;  %vm5401_vm3 = vcmp.ge.s32.totalorder %v7645_v22, 4  ;;  %vm5402_vm5 = vcmp.lt.s32.totalorder %v7645_v22, 6 }
 0x3a4   :  { %6925 = vmatprep.subr.mxu1 %v7574_v3 }
 0x3a5   :  { %v3602_v43 = vand.u32 4294901760, %v3601_v41 }
 0x3aa   :  { %6923 = vmatmul.mubr.f32.vlgmr.msra.gmra.mrb[2].mxu1 %v2179_v8 }
 0x3ab   :  { %6926 = vmatpush3.msra.mxu1 %v2114_v30  ;;  %6927 = vmatprep.mubr.msk.f32.mxu1 %vm7575_vm2, %v7574_v3  ;;  %v3505_v30 = vadd.f32 %v6450_v28, %v6445_v24 }
 0x3ac   :  { %6930 = vmatprep.subr.mxu1 %v7574_v3 }
 0x3ad   :  { %v3523_v33 = vand.u32 4294901760, %v3505_v30 }
 0x3af   :  { %v7309_v37 = vpack.c.bf16 %v3523_v33, %v3520_v32  ;;  %v3606_v38 = vsub.f32 %v3505_v30, %v3523_v33 }
 0x3b1   :  { %7310 = vmatpush3.bf16.msra.mxu0 %v7309_v37  ;;  %v3607_v40 = vand.u32 4294901760, %v3606_v38 }
 0x3b2   :  { %6928 = vmatmul.mubr.f32.vlgmr.msra.gmra.mrb[2].mxu1 %v2179_v8  ;;  %6994 = vmatprep.subr.mxu0 %v7574_v3 }
 0x3b3   :  { %6931 = vmatpush3.msra.mxu1 %v2563_v9  ;;  %6932 = vmatprep.mubr.msk.f32.mxu1 %vm7575_vm2, %v7574_v3  ;;  %v3608_v42 = vsub.f32 %v3606_v38, %v3607_v40 }
 0x3b4   :  { %6935 = vmatprep.subr.mxu1 %v7574_v3 }
 0x3b5   :  { %6995 = vmatpush3.msra.mxu0 %v3526_v55 }
 0x3b6   :  { %7311 = vmatprep.subr.bf16.mxu0 %v7573_v2 }
 0x3ba   :  { %6933 = vmatmul.mubr.f32.vlgmr.msra.gmra.mrb[2].mxu1 %v2632_v53 }
 0x3bb   :  { %6936 = vmatpush3.msra.mxu1 %v2643_v56  ;;  %6937 = vmatprep.mubr.msk.f32.mxu1 %vm7575_vm2, %v7574_v3 }
 0x3bc   :  { %6940 = vmatprep.subr.mxu1 %v7574_v3 }
 0x3c2   :  { %6938 = vmatmul.mubr.f32.vlgmr.msra.gmra.mrb[2].mxu1 %v2628_v44 }
 0x3c3   :  { %6941 = vmatpush3.msra.mxu1 %v2640_v46  ;;  %6942 = vmatprep.mubr.msk.f32.mxu1 %vm7575_vm2, %v7574_v3  ;;  %v7321_v46 = vpack.c.bf16 %v3607_v40, %v3600_v52 }
 0x3c4   :  { %6945 = vmatprep.subr.mxu1 %v7574_v3 }
 0x3ca   :  { %6943 = vmatmul.mubr.f32.vlgmr.msra.gmra.mrb[2].mxu1 %v2629_v45  ;;  %v7315_v45 = vpack.c.bf16 %v3606_v38, %v3599_v34  ;;  %v4004_v38 = vstv %s6456_s23 }
 0x3cb   :  { %6946 = vmatpush3.msra.mxu1 %v2563_v9  ;;  %6947 = vmatprep.mubr.msk.f32.mxu1 %vm7575_vm2, %v7574_v3  ;;  %v4005_v52 = vmul.f32 %v7653_v26, %v4004_v38 }
 0x3cc   :  { %6950 = vmatprep.subr.mxu1 %v7574_v3 }
 0x3d2   :  { %6948 = vmatmul.mubr.f32.vlgmr.msra.gmra.mrb[2].mxu1 %v2630_v47 }
 0x3d3   :  { %6951 = vmatpush3.msra.mxu1 %v2641_v48  ;;  %6952 = vmatprep.mubr.msk.f32.mxu1 %vm7575_vm2, %v7574_v3 }
 0x3d4   :  { %6955 = vmatprep.subr.mxu1 %v7574_v3 }
 0x3da   :  { %6953 = vmatmul.mubr.f32.vlgmr.msra.gmra.mrb[2].mxu1 %v2628_v44 }
 0x3db   :  { %6956 = vmatpush3.msra.mxu1 %v2563_v9  ;;  %6957 = vmatprep.mubr.msk.f32.mxu1 %vm7575_vm2, %v7574_v3 }
 0x3dc   :  { %6960 = vmatprep.subr.mxu1 %v7574_v3 }
 0x3e2   :  { %6958 = vmatmul.mubr.f32.vlgmr.msra.gmra.mrb[2].mxu1 %v2628_v44  ;;  %v3609_v44 = vand.u32 4294901760, %v3608_v42 }
 0x3e3   :  { %6961 = vmatpush3.msra.mxu1 %v3023_v10  ;;  %6962 = vmatprep.mubr.msk.f32.mxu1 %vm7575_vm2, %v7574_v3 }
 0x3e4   :  { %6965 = vmatprep.subr.mxu1 %v7574_v3  ;;  %v7312_v9 = vpack.c.bf16 %v3609_v44, %v3602_v43 }
 0x3ea   :  { %6963 = vmatmul.mubr.f32.vlgmr.msra.gmra.mrb[2].mxu1 %v3092_v15  ;;  %v4013_v15 = vmul.f32 %v7653_v26, %v4012_v58 }
 0x3eb   :  { %6966 = vmatpush3.msra.mxu1 %v3103_v16  ;;  %6967 = vmatprep.mubr.msk.f32.mxu1 %vm7575_vm2, %v7574_v3  ;;  %v4015_v16 = vstv %s6460_s1 }
 0x3ec   :  { %6970 = vmatprep.subr.mxu1 %v7574_v3  ;;  %v4016_v21 = vmul.f32 %v7659_v31, %v4015_v16  ;;  %v6468_v16 = vadd.s32 4294967294, %v7645_v22 }
 0x3f2   :  { %6968 = vmatmul.mubr.f32.vlgmr.msra.gmra.mrb[2].mxu1 %v3088_v6 }
 0x3f3   :  { %6971 = vmatpush3.msra.mxu1 %v3100_v12  ;;  %6972 = vmatprep.mubr.msk.f32.mxu1 %vm7575_vm2, %v7574_v3 }
 0x3f4   :  { %6975 = vmatprep.subr.mxu1 %v7574_v3 }
 0x3fa   :  { %6973 = vmatmul.mubr.f32.vlgmr.msra.gmra.mrb[2].mxu1 %v3089_v11 }
 0x3fb   :  { %6976 = vmatpush3.msra.mxu1 %v3023_v10  ;;  %6977 = vmatprep.mubr.msk.f32.mxu1 %vm7575_vm2, %v7574_v3 }
 0x3fc   :  { %6980 = vmatprep.subr.mxu1 %v7574_v3 }
 0x402   :  { %6978 = vmatmul.mubr.f32.vlgmr.msra.gmra.mrb[2].mxu1 %v3090_v13 }
 0x403   :  { %6981 = vmatpush3.msra.mxu1 %v3101_v54  ;;  %6982 = vmatprep.mubr.msk.f32.mxu1 %vm7575_vm2, %v7574_v3  ;;  %v4010_v54 = vstv %s6454_s20 }
 0x404   :  { %6985 = vmatprep.subr.mxu1 %v7574_v3  ;;  %v4011_v14 = vmul.f32 %v7650_v25, %v4010_v54 }
 0x406   :  { %v4014_v18 = vadd.f32 %v4013_v15, %v4011_v14  ;;  %v6471_v15 = vadd.s32 4294967290, %v7645_v22 }
 0x408   :  { %v4017_v23 = vadd.f32 %v4016_v21, %v4014_v18  ;;  %v5436_v18 = vmul.u32 2, %v6471_v15  ;;  %v5421_v21 = vmul.u32 2, %v6468_v16 }
 0x40a   :  { %6983 = vmatmul.mubr.f32.vlgmr.msra.gmra.mrb[2].mxu1 %v3088_v6  ;;  %v4023_v7 = vsel %vm4021_vm0, %v4017_v23, 0  ;;  %v5437_v23 = vadd.s32 6, %v5436_v18  ;;  %vm5423_vm9 = vcmp.eq.s32.totalorder %v7739_v51, %v5421_v21  ;;  %vm5422_vm11 = vcmp.eq.s32.totalorder %v7642_v20, %v5421_v21 }
 0x40b   :  { %6986 = vmatpush3.msra.mxu1 %v3023_v10  ;;  %6987 = vmatprep.mubr.msk.f32.mxu1 %vm7575_vm2, %v7574_v3  ;;  %v4094_v8 = vand.u32 4294901760, %v4023_v7  ;;  %vm5425_vm12 = vmand %vm5419_vm8, %vm5423_vm9 }
 0x40c   :  { %7326 = vmatprep.subr.bf16.mxu1 %v7573_v2  ;;  %vm5438_vm15 = vcmp.eq.s32.totalorder %v7642_v20, %v5437_v23  ;;  %vm5424_vm10 = vmand %vm5419_vm8, %vm5422_vm11  ;;  %vm5439_vm4 = vcmp.eq.s32.totalorder %v7739_v51, %v5437_v23  ;;  %vm5388_vm8 = vcmp.lt.s32.totalorder %v7645_v22, 2 }
 0x40d   :  { %v4095_v17 = vsub.f32 %v4023_v7, %v4094_v8  ;;  %v6469_v7 = vsel %vm5424_vm10, 1.0, %v7574_v3 }
 0x40f   :  { %v4096_v24 = vand.u32 4294901760, %v4095_v17 }
 0x411   :  { %v4097_v27 = vsub.f32 %v4095_v17, %v4096_v24 }
 0x412   :  { %6988 = vmatmul.mubr.f32.vlgmr.msra.gmra.mrb[2].mxu1 %v3088_v6  ;;  %v3511_v6 = vmul.f32 %v3510_v5, %v3509_v4 }
 0x413   :  { %7138 = vmatprep.mubr.msk.f32.mxu1 %vm7575_vm2, %v7574_v3  ;;  %v4098_v30 = vand.u32 4294901760, %v4097_v27 }
 0x4e5   :  { %v3464_v47 = vpop.f32.mrb[2].mxu1 }
 0x4e6   :  { %v3514_v48 = vsel %vm3512_vm6, %v3464_v47, 0  ;;  %v6989_v49 = vpop.f32.mrb[3].mxu1  ;;  %vm5434_vm6 = vmand %vm5432_vm7, %vm5433_vm13 }
 0x4e7   :  { %v3587_v53 = vand.u32 4294901760, %v3514_v48  ;;  %vm5403_vm7 = vmand %vm5401_vm3, %vm5402_vm5 }
 0x4e9   :  { %v3588_v56 = vsub.f32 %v3514_v48, %v3587_v53 }
 0x4eb   :  { %v3589_v59 = vand.u32 4294901760, %v3588_v56 }
 0x4ed   :  { %v3590_v60 = vsub.f32 %v3588_v56, %v3589_v59 }
 0x4ef   :  { %v3591_v62 = vand.u32 4294901760, %v3590_v60 }
 0x4f1   :  { %6997 = vmatmul.mubr.f32.vlgmr.msra.gmra.mrb[2].mxu0 %v3591_v62 }
 0x4f2   :  { %7313 = vmatpush3.bf16.msra.mxu0 %v7312_v9  ;;  %7005 = vmatprep.mubr.msk.f32.mxu0 %vm7575_vm2, %v7574_v3 }
 0x4f3   :  { %7003 = vmatprep.subr.mxu0 %v7574_v3 }
 0x4f6   :  { %7004 = vmatpush3.msra.mxu0 %v3616_v63 }
 0x4f7   :  { %7314 = vmatprep.subr.bf16.mxu0 %v7573_v2 }
 0x4f9   :  { %7006 = vmatmul.mubr.f32.vlgmr.msra.gmra.mrb[2].mxu0 %v3587_v53 }
 0x4fa   :  { %7316 = vmatpush3.bf16.msra.mxu0 %v7315_v45  ;;  %7014 = vmatprep.mubr.msk.f32.mxu0 %vm7575_vm2, %v7574_v3 }
 0x4fb   :  { %7012 = vmatprep.subr.mxu0 %v7574_v3 }
 0x4fe   :  { %7013 = vmatpush3.msra.mxu0 %v3613_v50 }
 0x4ff   :  { %7317 = vmatprep.subr.bf16.mxu0 %v7573_v2 }
 0x501   :  { %7015 = vmatmul.mubr.f32.vlgmr.msra.gmra.mrb[2].mxu0 %v3588_v56 }
 0x502   :  { %7319 = vmatpush3.bf16.msra.mxu0 %v7309_v37  ;;  %7023 = vmatprep.mubr.msk.f32.mxu0 %vm7575_vm2, %v7574_v3 }
 0x503   :  { %7021 = vmatprep.subr.mxu0 %v7574_v3 }
 0x506   :  { %7022 = vmatpush3.msra.mxu0 %v3526_v55 }
 0x507   :  { %7320 = vmatprep.subr.bf16.mxu0 %v7573_v2 }
 0x509   :  { %7024 = vmatmul.mubr.f32.vlgmr.msra.gmra.mrb[2].mxu0 %v3589_v59  ;;  %v4927_v59 = vstv %s6458_s26 }
 0x50a   :  { %7322 = vmatpush3.bf16.msra.mxu0 %v7321_v46  ;;  %7032 = vmatprep.mubr.msk.f32.mxu0 %vm7575_vm2, %v7574_v3  ;;  %v4928_v61 = vmul.f32 %v7653_v26, %v4927_v59 }
 0x50b   :  { %7030 = vmatprep.subr.mxu0 %v7574_v3 }
 0x50e   :  { %7031 = vmatpush3.msra.mxu0 %v3614_v57  ;;  %v4925_v57 = vstv %s6455_s25 }
 0x50f   :  { %7323 = vmatprep.subr.bf16.mxu0 %v7573_v2  ;;  %v4926_v60 = vmul.f32 %v7650_v25, %v4925_v57 }
 0x511   :  { %7033 = vmatmul.mubr.f32.vlgmr.msra.gmra.mrb[2].mxu0 %v3587_v53  ;;  %v4929_v63 = vadd.f32 %v4928_v61, %v4926_v60 }
 0x512   :  { %7325 = vmatpush3.bf16.msra.mxu0 %v7309_v37  ;;  %7041 = vmatprep.mubr.msk.f32.mxu0 %vm7575_vm2, %v7574_v3  ;;  %v4002_v37 = vstv %s6453_s22 }
 0x513   :  { %7039 = vmatprep.subr.mxu0 %v7574_v3  ;;  %v4003_v19 = vmul.f32 %v7650_v25, %v4002_v37 }
 0x515   :  { %v4006_v40 = vadd.f32 %v4005_v52, %v4003_v19 }
 0x516   :  { %7040 = vmatpush3.msra.mxu0 %v3526_v55  ;;  %v4008_v55 = vmul.f32 %v7659_v31, %v4007_v39 }
 0x517   :  { %7044 = vmatprep.subr.mxu0 %v7574_v3 }
 0x518   :  { %v4009_v41 = vadd.f32 %v4008_v55, %v4006_v40 }
 0x519   :  { %7042 = vmatmul.mubr.f32.vlgmr.msra.gmra.mrb[2].mxu0 %v3587_v53 }
 0x51a   :  { %7046 = vmatprep.mubr.msk.f32.mxu0 %vm7575_vm2, %v7574_v3  ;;  %v4475_v42 = vsel %vm4021_vm0, %v4009_v41, 0 }
 0x51b   :  { %v4545_v44 = vand.u32 4294901760, %v4475_v42 }
 0x51d   :  { %v4546_v45 = vsub.f32 %v4475_v42, %v4545_v44  ;;  %v6465_v42 = vadd.s32 4294967292, %v7645_v22 }
 0x51f   :  { %v4547_v47 = vand.u32 4294901760, %v4546_v45 }
 0x521   :  { %v4548_v49 = vsub.f32 %v4546_v45, %v4547_v47 }
 0x523   :  { %v4549_v53 = vand.u32 4294901760, %v4548_v49 }
 0x5ec   :  { %v3987_v10 = vpop.f32.mrb[2].mxu0 }
 0x5ed   :  { %v7363_v11 = vadd.f32 %v3987_v10, %v3511_v6  ;;  %v7043_v12 = vpop.f32.mrb[3].mxu0 }
 0x5ef   :  { %v3991_v13 = vmax.f32 %v7363_v11, 0.0 }
 0x5f1   :  { %4933 = vrot.lane.b32.xlu1 %v3991_v13, %s7577_s27  ;;  %4019 = vrot.lane.b32.xlu0 %v3991_v13, %s7576_s0  ;;  %v4477_v43 = vsel %vm4025_vm1, %v3991_v13, 0  ;;  %s6461_s0 = sld [smem:[#allocation6 + $0x1a]]  ;;  %s6462_s27 = sld [smem:[#allocation6 + $0x1d]] }
 0x5f2   :  { %v4480_v9 = vand.u32 4294901760, %v4477_v43 }
 0x5f4   :  { %v4557_v46 = vsub.f32 %v4477_v43, %v4480_v9  ;;  %v5405_v43 = vmul.u32 2, %v6465_v42 }
 0x5f6   :  { %v4558_v48 = vand.u32 4294901760, %v4557_v46 }
 0x5f7   :  { %v4930_v62 = vstv %s6461_s0 }
 0x5f8   :  { %v4559_v50 = vsub.f32 %v4557_v46, %v4558_v48  ;;  %v4931_v0 = vmul.f32 %v7659_v31, %v4930_v62 }
 0x5fa   :  { %v4560_v56 = vand.u32 4294901760, %v4559_v50  ;;  %v4932_v1 = vadd.f32 %v4931_v0, %v4929_v63 }
 0x5fc   :  { %v4936_v25 = vsel %vm4021_vm0, %v4932_v1, 0  ;;  %vm5440_vm0 = vmand %vm5434_vm6, %vm5438_vm15  ;;  %vm5450_vm15 = vcmask 80896  }
 0x5fd   :  { %v5006_v5 = vand.u32 4294901760, %v4936_v25 }
 0x5ff   :  { %v5007_v10 = vsub.f32 %v4936_v25, %v5006_v5 }
 0x601   :  { %v5008_v11 = vand.u32 4294901760, %v5007_v10 }
 0x603   :  { %v5009_v13 = vsub.f32 %v5007_v10, %v5008_v11 }
 0x605   :  { %v5010_v58 = vand.u32 4294901760, %v5009_v13 }
 0x663   :  { %v4020_v28 = vpop.permute.xlu0 %4019  ;;  %v4934_v4 = vpop.permute.xlu1 %4933 }
 0x664   :  { %v4026_v29 = vsel %vm4025_vm1, %v4020_v28, 0  ;;  %v4938_v26 = vsel %vm4025_vm1, %v4934_v4, 0  ;;  %vm5441_vm1 = vmand %vm5434_vm6, %vm5439_vm4 }
 0x665   :  { %v4029_v32 = vand.u32 4294901760, %v4026_v29  ;;  %v4941_v6 = vand.u32 4294901760, %v4938_v26 }
 0x667   :  { %v4106_v33 = vsub.f32 %v4026_v29, %v4029_v32  ;;  %7045 = vmatpush3.msra.mxu0 %v4029_v32  ;;  %v5018_v31 = vsub.f32 %v4938_v26, %v4941_v6 }
 0x668   :  { %7047 = vmatmul.mubr.f32.vlgmr.msra.gmra.mrb[4].mxu0 %v4098_v30  ;;  %7049 = vmatprep.subr.mxu0 %v7574_v3 }
 0x669   :  { %v4107_v34 = vand.u32 4294901760, %v4106_v33  ;;  %7051 = vmatprep.mubr.msk.f32.mxu0 %vm7575_vm2, %v7574_v3  ;;  %v5019_v12 = vand.u32 4294901760, %v5018_v31 }
 0x66b   :  { %v4108_v35 = vsub.f32 %v4106_v33, %v4107_v34  ;;  %v5020_v54 = vsub.f32 %v5018_v31, %v5019_v12 }
 0x66d   :  { %v4109_v36 = vand.u32 4294901760, %v4108_v35  ;;  %v5021_v14 = vand.u32 4294901760, %v5020_v54 }
 0x66f   :  { %7050 = vmatpush3.msra.mxu0 %v4109_v36 }
 0x670   :  { %7052 = vmatmul.mubr.f32.vlgmr.msra.gmra.mrb[4].mxu0 %v4094_v8  ;;  %7054 = vmatprep.subr.mxu0 %v7574_v3 }
 0x671   :  { %7055 = vmatpush3.msra.mxu0 %v4106_v33  ;;  %7056 = vmatprep.mubr.msk.f32.mxu0 %vm7575_vm2, %v7574_v3 }
 0x672   :  { %7059 = vmatprep.subr.mxu0 %v7574_v3 }
 0x678   :  { %7057 = vmatmul.mubr.f32.vlgmr.msra.gmra.mrb[4].mxu0 %v4095_v17  ;;  %v6472_v17 = vsel %vm5440_vm0, 1.0, %v7574_v3 }
 0x679   :  { %7060 = vmatpush3.msra.mxu0 %v4029_v32  ;;  %7061 = vmatprep.mubr.msk.f32.mxu0 %vm7575_vm2, %v7574_v3  ;;  %v5446_v27 = vadd.f32 %v6472_v17, %v6469_v7 }
 0x67a   :  { %7064 = vmatprep.subr.mxu0 %v7574_v3 }
 0x67b   :  { %v5457_v29 = vand.u32 4294901760, %v5446_v27 }
 0x67d   :  { %v5535_v33 = vsub.f32 %v5446_v27, %v5457_v29 }
 0x67f   :  { %v5536_v36 = vand.u32 4294901760, %v5535_v33 }
 0x680   :  { %7062 = vmatmul.mubr.f32.vlgmr.msra.gmra.mrb[4].mxu0 %v4096_v24  ;;  %v6473_v24 = vsel %vm5441_vm1, 1.0, %v7574_v3 }
 0x681   :  { %7065 = vmatpush3.msra.mxu0 %v4107_v34  ;;  %7066 = vmatprep.mubr.msk.f32.mxu0 %vm7575_vm2, %v7574_v3  ;;  %v5537_v37 = vsub.f32 %v5535_v33, %v5536_v36 }
 0x682   :  { %7069 = vmatprep.subr.mxu0 %v7574_v3 }
 0x683   :  { %v5538_v19 = vand.u32 4294901760, %v5537_v37 }
 0x688   :  { %7067 = vmatmul.mubr.f32.vlgmr.msra.gmra.mrb[4].mxu0 %v4094_v8 }
 0x689   :  { %7070 = vmatpush3.msra.mxu0 %v4029_v32  ;;  %7071 = vmatprep.mubr.msk.f32.mxu0 %vm7575_vm2, %v7574_v3 }
 0x68a   :  { %7074 = vmatprep.subr.mxu0 %v7574_v3 }
 0x690   :  { %7072 = vmatmul.mubr.f32.vlgmr.msra.gmra.mrb[4].mxu0 %v4094_v8  ;;  %v6470_v8 = vsel %vm5425_vm12, 1.0, %v7574_v3 }
 0x691   :  { %7075 = vmatpush3.msra.mxu0 %v4480_v9  ;;  %7076 = vmatprep.mubr.msk.f32.mxu0 %vm7575_vm2, %v7574_v3  ;;  %v5447_v28 = vadd.f32 %v6473_v24, %v6470_v8 }
 0x692   :  { %7079 = vmatprep.subr.mxu0 %v7574_v3 }
 0x693   :  { %v5454_v30 = vsel %vm1576_vm14, %v5447_v28, 0 }
 0x694   :  { %v5460_v32 = vand.u32 4294901760, %v5454_v30 }
 0x696   :  { %v8102_v34 = vpack.c.bf16 %v5460_v32, %v5457_v29  ;;  %v5542_v35 = vsub.f32 %v5454_v30, %v5460_v32 }
 0x698   :  { %7077 = vmatmul.mubr.f32.vlgmr.msra.gmra.mrb[4].mxu0 %v4549_v53  ;;  %7328 = vmatpush3.bf16.msra.mxu1 %v8102_v34  ;;  %v5543_v38 = vand.u32 4294901760, %v5542_v35  ;;  %v7333_v55 = vpack.c.bf16 %v5542_v35, %v5535_v33 }
 0x699   :  { %7080 = vmatpush3.msra.mxu0 %v4560_v56  ;;  %7081 = vmatprep.mubr.msk.f32.mxu0 %vm7575_vm2, %v7574_v3 }
 0x69a   :  { %7084 = vmatprep.subr.mxu0 %v7574_v3  ;;  %7329 = vmatprep.subr.bf16.mxu1 %v7573_v2  ;;  %v5544_v52 = vsub.f32 %v5542_v35, %v5543_v38  ;;  %v7339_v41 = vpack.c.bf16 %v5543_v38, %v5536_v36 }
 0x69c   :  { %v5545_v39 = vand.u32 4294901760, %v5544_v52 }
 0x69e   :  { %v7330_v40 = vpack.c.bf16 %v5545_v39, %v5538_v19 }
 0x6a0   :  { %7082 = vmatmul.mubr.f32.vlgmr.msra.gmra.mrb[4].mxu0 %v4545_v44 }
 0x6a1   :  { %7085 = vmatpush3.msra.mxu0 %v4557_v46  ;;  %7086 = vmatprep.mubr.msk.f32.mxu0 %vm7575_vm2, %v7574_v3 }
 0x6a2   :  { %7089 = vmatprep.subr.mxu0 %v7574_v3 }
 0x6a8   :  { %7087 = vmatmul.mubr.f32.vlgmr.msra.gmra.mrb[4].mxu0 %v4546_v45 }
 0x6a9   :  { %7090 = vmatpush3.msra.mxu0 %v4480_v9  ;;  %7091 = vmatprep.mubr.msk.f32.mxu0 %vm7575_vm2, %v7574_v3 }
 0x6aa   :  { %7094 = vmatprep.subr.mxu0 %v7574_v3 }
 0x6b0   :  { %7092 = vmatmul.mubr.f32.vlgmr.msra.gmra.mrb[4].mxu0 %v4547_v47 }
 0x6b1   :  { %7095 = vmatpush3.msra.mxu0 %v4558_v48  ;;  %7096 = vmatprep.mubr.msk.f32.mxu0 %vm7575_vm2, %v7574_v3 }
 0x6b2   :  { %7099 = vmatprep.subr.mxu0 %v7574_v3 }
 0x6b8   :  { %7097 = vmatmul.mubr.f32.vlgmr.msra.gmra.mrb[4].mxu0 %v4545_v44 }
 0x6b9   :  { %7100 = vmatpush3.msra.mxu0 %v4480_v9  ;;  %7101 = vmatprep.mubr.msk.f32.mxu0 %vm7575_vm2, %v7574_v3  ;;  %v5406_v9 = vadd.s32 6, %v5405_v43 }
 0x6ba   :  { %7104 = vmatprep.subr.mxu0 %v7574_v3 }
 0x6bb   :  { %vm5408_vm13 = vcmp.eq.s32.totalorder %v7739_v51, %v5406_v9  ;;  %vm5407_vm10 = vcmp.eq.s32.totalorder %v7642_v20, %v5406_v9 }
 0x6bc   :  { %vm5410_vm4 = vmand %vm5403_vm7, %vm5408_vm13 }
 0x6bd   :  { %vm5409_vm0 = vmand %vm5403_vm7, %vm5407_vm10  ;;  %v6467_v50 = vsel %vm5410_vm4, 1.0, %v7574_v3 }
 0x6be   :  { %v6466_v57 = vsel %vm5409_vm0, 1.0, %v7574_v3 }
 0x6c0   :  { %7102 = vmatmul.mubr.f32.vlgmr.msra.gmra.mrb[4].mxu0 %v4545_v44  ;;  %v5390_v44 = vmul.u32 2, %v7645_v22 }
 0x6c1   :  { %7105 = vmatpush3.msra.mxu0 %v4941_v6  ;;  %7106 = vmatprep.mubr.msk.f32.mxu0 %vm7575_vm2, %v7574_v3 }
 0x6c2   :  { %7109 = vmatprep.subr.mxu0 %v7574_v3  ;;  %vm5392_vm9 = vcmp.eq.s32.totalorder %v7739_v51, %v5390_v44  ;;  %vm5391_vm11 = vcmp.eq.s32.totalorder %v7642_v20, %v5390_v44 }
 0x6c3   :  { %vm5394_vm12 = vmand %vm5388_vm8, %vm5392_vm9 }
 0x6c4   :  { %vm5393_vm6 = vmand %vm5388_vm8, %vm5391_vm11  ;;  %v6464_v22 = vsel %vm5394_vm12, 1.0, %v7574_v3 }
 0x6c5   :  { %v6463_v56 = vsel %vm5393_vm6, 1.0, %v7574_v3  ;;  %v5416_v59 = vadd.f32 %v6467_v50, %v6464_v22  ;;  %v6379_v22 = vstv %s6462_s27 }
 0x6c6   :  { %v5415_v61 = vadd.f32 %v6466_v57, %v6463_v56 }
 0x6c7   :  { %v5918_v62 = vsel %vm1576_vm14, %v5416_v59, 0 }
 0x6c8   :  { %7107 = vmatmul.mubr.f32.vlgmr.msra.gmra.mrb[4].mxu0 %v5010_v58  ;;  %v5921_v63 = vand.u32 4294901760, %v5415_v61  ;;  %v5924_v0 = vand.u32 4294901760, %v5918_v62 }
 0x6c9   :  { %7110 = vmatpush3.msra.mxu0 %v5021_v14  ;;  %7111 = vmatprep.mubr.msk.f32.mxu0 %vm7575_vm2, %v7574_v3 }
 0x6ca   :  { %7114 = vmatprep.subr.mxu0 %v7574_v3  ;;  %v5999_v4 = vsub.f32 %v5415_v61, %v5921_v63  ;;  %v6006_v25 = vsub.f32 %v5918_v62, %v5924_v0  ;;  %v7345_v13 = vpack.c.bf16 %v5924_v0, %v5921_v63 }
 0x6cc   :  { %v7351_v18 = vpack.c.bf16 %v6006_v25, %v5999_v4 }
 0x6d0   :  { %7112 = vmatmul.mubr.f32.vlgmr.msra.gmra.mrb[4].mxu0 %v5006_v5 }
 0x6d1   :  { %7115 = vmatpush3.msra.mxu0 %v5018_v31  ;;  %7116 = vmatprep.mubr.msk.f32.mxu0 %vm7575_vm2, %v7574_v3 }
 0x6d2   :  { %7119 = vmatprep.subr.mxu0 %v7574_v3 }
 0x6d8   :  { %7117 = vmatmul.mubr.f32.vlgmr.msra.gmra.mrb[4].mxu0 %v5007_v10 }
 0x6d9   :  { %7120 = vmatpush3.msra.mxu0 %v4941_v6  ;;  %7121 = vmatprep.mubr.msk.f32.mxu0 %vm7575_vm2, %v7574_v3 }
 0x6da   :  { %7124 = vmatprep.subr.mxu0 %v7574_v3 }
 0x6e0   :  { %7122 = vmatmul.mubr.f32.vlgmr.msra.gmra.mrb[4].mxu0 %v5008_v11 }
 0x6e1   :  { %7125 = vmatpush3.msra.mxu0 %v5019_v12  ;;  %7126 = vmatprep.mubr.msk.f32.mxu0 %vm7575_vm2, %v7574_v3 }
 0x6e2   :  { %7129 = vmatprep.subr.mxu0 %v7574_v3 }
 0x6e8   :  { %7127 = vmatmul.mubr.f32.vlgmr.msra.gmra.mrb[4].mxu0 %v5006_v5 }
 0x6e9   :  { %7130 = vmatpush3.msra.mxu0 %v4941_v6  ;;  %7131 = vmatprep.mubr.msk.f32.mxu0 %vm7575_vm2, %v7574_v3  ;;  %v6007_v6 = vand.u32 4294901760, %v6006_v25 }
 0x6eb   :  { %v6008_v11 = vsub.f32 %v6006_v25, %v6007_v6 }
 0x6ed   :  { %v6009_v58 = vand.u32 4294901760, %v6008_v11 }
 0x6f0   :  { %7132 = vmatmul.mubr.f32.vlgmr.msra.gmra.mrb[4].mxu0 %v5006_v5  ;;  %v6000_v5 = vand.u32 4294901760, %v5999_v4 }
 0x6f2   :  { %v6001_v31 = vsub.f32 %v5999_v4, %v6000_v5  ;;  %v7357_v21 = vpack.c.bf16 %v6007_v6, %v6000_v5 }
 0x6f4   :  { %v6002_v54 = vand.u32 4294901760, %v6001_v31 }
 0x6f6   :  { %v7348_v15 = vpack.c.bf16 %v6009_v58, %v6002_v54 }
 0x7c3   :  { %v5382_v45 = vpop.f32.mrb[4].mxu0 }
 0x7c4   :  { %v5449_v46 = vrot.slane %v5382_v45, 1  ;;  %v7133_v47 = vpop.f32.mrb[5].mxu0  ;;  %v5915_v1 = vsel %vm5450_vm15, %v5382_v45, 0 }
 0x7c5   :  { %v5987_v26 = vand.u32 4294901760, %v5915_v1 }
 0x7c6   :  { %v5451_v48 = vsel %vm5450_vm15, %v5449_v46, 0 }
 0x7c7   :  { %v5523_v49 = vand.u32 4294901760, %v5451_v48  ;;  %v5988_v10 = vsub.f32 %v5915_v1, %v5987_v26 }
 0x7c9   :  { %v5524_v51 = vsub.f32 %v5451_v48, %v5523_v49  ;;  %v5989_v12 = vand.u32 4294901760, %v5988_v10 }
 0x7cb   :  { %v5525_v53 = vand.u32 4294901760, %v5524_v51  ;;  %v5990_v14 = vsub.f32 %v5988_v10, %v5989_v12 }
 0x7cd   :  { %v5526_v60 = vsub.f32 %v5524_v51, %v5525_v53  ;;  %v5991_v16 = vand.u32 4294901760, %v5990_v14 }
 0x7cf   :  { %v5527_v20 = vand.u32 4294901760, %v5526_v60 }
 0x7d1   :  { %7139 = vmatmul.mubr.f32.vlgmr.msra.gmra.mrb[4].mxu1 %v5527_v20 }
 0x7d2   :  { %7331 = vmatpush3.bf16.msra.mxu1 %v7330_v40  ;;  %7145 = vmatprep.mubr.msk.f32.mxu1 %vm7575_vm2, %v7574_v3 }
 0x7d3   :  { %7332 = vmatprep.subr.bf16.mxu1 %v7573_v2 }
 0x7d5   :  { %7146 = vmatmul.mubr.f32.vlgmr.msra.gmra.mrb[6].mxu1 %v5523_v49 }
 0x7d6   :  { %7334 = vmatpush3.bf16.msra.mxu1 %v7333_v55  ;;  %7152 = vmatprep.mubr.msk.f32.mxu1 %vm7575_vm2, %v7574_v3 }
 0x7d7   :  { %7335 = vmatprep.subr.bf16.mxu1 %v7573_v2 }
 0x7d9   :  { %7153 = vmatmul.mubr.f32.vlgmr.msra.gmra.mrb[8].mxu1 %v5524_v51 }
 0x7da   :  { %7337 = vmatpush3.bf16.msra.mxu1 %v8102_v34  ;;  %7159 = vmatprep.mubr.msk.f32.mxu1 %vm7575_vm2, %v7574_v3 }
 0x7db   :  { %7338 = vmatprep.subr.bf16.mxu1 %v7573_v2 }
 0x7dd   :  { %7160 = vmatmul.mubr.f32.vlgmr.msra.gmra.mrb[10].mxu1 %v5525_v53 }
 0x7de   :  { %7340 = vmatpush3.bf16.msra.mxu1 %v7339_v41  ;;  %7166 = vmatprep.mubr.msk.f32.mxu1 %vm7575_vm2, %v7574_v3 }
 0x7df   :  { %7341 = vmatprep.subr.bf16.mxu1 %v7573_v2 }
 0x7e1   :  { %7167 = vmatmul.mubr.f32.vlgmr.msra.gmra.mrb[12].mxu1 %v5523_v49 }
 0x7e2   :  { %7343 = vmatpush3.bf16.msra.mxu1 %v8102_v34  ;;  %7173 = vmatprep.mubr.msk.f32.mxu1 %vm7575_vm2, %v7574_v3 }
 0x7e3   :  { %7344 = vmatprep.subr.bf16.mxu1 %v7573_v2 }
 0x7e5   :  { %7174 = vmatmul.mubr.f32.vlgmr.msra.gmra.mrb[14].mxu1 %v5523_v49 }
 0x7e6   :  { %7346 = vmatpush3.bf16.msra.mxu1 %v7345_v13  ;;  %7180 = vmatprep.mubr.msk.f32.mxu1 %vm7575_vm2, %v7574_v3 }
 0x7e7   :  { %7347 = vmatprep.subr.bf16.mxu1 %v7573_v2 }
 0x7e9   :  { %7181 = vmatmul.mubr.f32.vlgmr.msra.gmra.mrb[16].mxu1 %v5991_v16 }
 0x7ea   :  { %7349 = vmatpush3.bf16.msra.mxu1 %v7348_v15  ;;  %7187 = vmatprep.mubr.msk.f32.mxu1 %vm7575_vm2, %v7574_v3 }
 0x7eb   :  { %7350 = vmatprep.subr.bf16.mxu1 %v7573_v2 }
 0x7ed   :  { %7188 = vmatmul.mubr.f32.vlgmr.msra.gmra.mrb[18].mxu1 %v5987_v26 }
 0x7ee   :  { %7352 = vmatpush3.bf16.msra.mxu1 %v7351_v18  ;;  %7194 = vmatprep.mubr.msk.f32.mxu1 %vm7575_vm2, %v7574_v3 }
 0x7ef   :  { %7353 = vmatprep.subr.bf16.mxu1 %v7573_v2 }
 0x7f1   :  { %7195 = vmatmul.mubr.f32.vlgmr.msra.gmra.mrb[20].mxu1 %v5988_v10 }
 0x7f2   :  { %7355 = vmatpush3.bf16.msra.mxu1 %v7345_v13  ;;  %7201 = vmatprep.mubr.msk.f32.mxu1 %vm7575_vm2, %v7574_v3 }
 0x7f3   :  { %7356 = vmatprep.subr.bf16.mxu1 %v7573_v2 }
 0x7f5   :  { %7202 = vmatmul.mubr.f32.vlgmr.msra.gmra.mrb[22].mxu1 %v5989_v12 }
 0x7f6   :  { %7358 = vmatpush3.bf16.msra.mxu1 %v7357_v21  ;;  %7208 = vmatprep.mubr.msk.f32.mxu1 %vm7575_vm2, %v7574_v3 }
 0x7f7   :  { %7359 = vmatprep.subr.bf16.mxu1 %v7573_v2 }
 0x7f9   :  { %7209 = vmatmul.mubr.f32.vlgmr.msra.gmra.mrb[24].mxu1 %v5987_v26 }
 0x7fa   :  { %7361 = vmatpush3.bf16.msra.mxu1 %v7345_v13  ;;  %7215 = vmatprep.mubr.msk.f32.mxu1 %vm7575_vm2, %v7574_v3  ;;  %vm6382_vm2 = vcmask 57344  }
 0x7fd   :  { %7216 = vmatmul.mubr.f32.vlgmr.msra.gmra.mrb[26].mxu1 %v5987_v26 }
 0x8a4   :  { %v5529_v23 = vpop.f32.mrb[4].mxu1 }
 0x8a5   :  { %v7140_v7 = vpop.f32.mrb[5].mxu1 }
 0x8a8   :  { %v5610_v8 = vpop.f32.mrb[6].mxu1 }
 0x8a9   :  { %v5611_v17 = vadd.f32 %v5610_v8, %v5529_v23  ;;  %v7147_v24 = vpop.f32.mrb[7].mxu1 }
 0x8ac   :  { %v5686_v27 = vpop.f32.mrb[8].mxu1 }
 0x8ad   :  { %v5687_v28 = vadd.f32 %v5686_v27, %v5611_v17  ;;  %v7154_v29 = vpop.f32.mrb[9].mxu1 }
 0x8b0   :  { %v5761_v30 = vpop.f32.mrb[10].mxu1 }
 0x8b1   :  { %v5762_v32 = vadd.f32 %v5761_v30, %v5687_v28  ;;  %v7161_v33 = vpop.f32.mrb[11].mxu1 }
 0x8b4   :  { %v5838_v34 = vpop.f32.mrb[12].mxu1 }
 0x8b5   :  { %v5839_v35 = vadd.f32 %v5838_v34, %v5762_v32  ;;  %v7168_v2 = vpop.f32.mrb[13].mxu1 }
 0x8b8   :  { %v5911_v36 = vpop.f32.mrb[14].mxu1 }
 0x8b9   :  { %v5912_v37 = vadd.f32 %v5911_v36, %v5839_v35  ;;  %v7175_v38 = vpop.f32.mrb[15].mxu1 }
 0x8bc   :  { %v5993_v19 = vpop.f32.mrb[16].mxu1 }
 0x8bd   :  { %v5994_v3 = vadd.f32 %v5993_v19, %v5912_v37  ;;  %v7182_v52 = vpop.f32.mrb[17].mxu1 }
 0x8c0   :  { %v6074_v39 = vpop.f32.mrb[18].mxu1 }
 0x8c1   :  { %v6075_v40 = vadd.f32 %v6074_v39, %v5994_v3  ;;  %v7189_v55 = vpop.f32.mrb[19].mxu1 }
 0x8c4   :  { %v6150_v41 = vpop.f32.mrb[20].mxu1 }
 0x8c5   :  { %v6151_v42 = vadd.f32 %v6150_v41, %v6075_v40  ;;  %v7196_v43 = vpop.f32.mrb[21].mxu1 }
 0x8c8   :  { %v6225_v44 = vpop.f32.mrb[22].mxu1 }
 0x8c9   :  { %v6226_v9 = vadd.f32 %v6225_v44, %v6151_v42  ;;  %v7203_v45 = vpop.f32.mrb[23].mxu1 }
 0x8cc   :  { %v6302_v46 = vpop.f32.mrb[24].mxu1 }
 0x8cd   :  { %v6303_v47 = vadd.f32 %v6302_v46, %v6226_v9  ;;  %v7210_v48 = vpop.f32.mrb[25].mxu1 }
 0x8d0   :  { %v6375_v49 = vpop.f32.mrb[26].mxu1 }
 0x8d1   :  { %v6376_v50 = vadd.f32 %v6375_v49, %v6303_v47  ;;  %v7217_v51 = vpop.f32.mrb[27].mxu1 }
 0x8d3   :  { %v6380_v53 = vadd.f32 %v6379_v22, %v6376_v50 }
 0x8d5   :  { %v6381_v56 = vmax.f32 %v6380_v53, 0.0 }
 0x8d7   :  { %6383 = vst.msk [vmem:[#allocation7] sm:$0x1] %vm6382_vm2, %v6381_v56 }
 0x8d8   :  { %7552 = shalt.err (!%p7549_p3)
}
 0x8d9   :  { %s7553_s6 = scalar_lea.hbm %s8170_s2, 16 }
 0x8da   :  { %p7554_p4 = scmp.ne.s32.totalorder %s8170_s2, %s7553_s6  ;;  %p7557_p5 = scmp.lt.u32.totalorder %s7553_s6, %s8170_s2 }
 0x8dc   :  { %p7559_p6 = pnand %p7557_p5, %p7554_p4 }
 0x8de   :  { %7562 = shalt.err (!%p7559_p6)
}
 0x8df   :  { %6393 = dma.vmem_to_hbm [thread:$0]  %s6391_s29, 16, %s8170_s2, [#allocation4]  }
 0x8e0   :  { %7567 = dma.done.wait [#allocation4], 16  }
 0x8e1   :  { %7568 = vsyncadd [#allocation4], 4294967280 }
 0x8e2   :  { %6397 = vsyncpa [#allocation3], 1 }
 0x8e3   :  { %6398 = vsyncpa [#allocation4], 1 }
 0x8e4   :  { %6399 = vsyncpa [#allocation5], 1 }

</bundles_post_ra>
